<compile_context>
chip_gen: v5e
topology: v5e:2x2
jax: 0.10.0
libtpu: 0.0.40
codegen_flags: <defaults>
</compile_context>

<pallas_src>
import jax
import jax.numpy as jnp
from jax import lax
from jax.experimental import pallas as pl
from jax.experimental.pallas import tpu as pltpu

EPS = 0.001        # BN eps inside ConvBN (module-level EPS in the spec)
ID_EPS = 1e-5      # default nn.BatchNorm2d eps for the identity branch


# ----------------------------------------------------------------------------
# Shared in-kernel helper: build the zero-padded tile in VMEM.
# Only the 1-wide border is zeroed (per step, megacore-safe); the interior is
# fully overwritten every step.
# ----------------------------------------------------------------------------
def _fill_padded(x_ref, xpad_ref):
    _, H, W, Cin = x_ref.shape
    dt = xpad_ref.dtype
    xpad_ref[0:1, :, :] = jnp.zeros((1, W + 2, Cin), dt)
    xpad_ref[H + 1:H + 2, :, :] = jnp.zeros((1, W + 2, Cin), dt)
    xpad_ref[:, 0:1, :] = jnp.zeros((H + 2, 1, Cin), dt)
    xpad_ref[:, W + 1:W + 2, :] = jnp.zeros((H + 2, 1, Cin), dt)
    xpad_ref[1:H + 1, 1:W + 1, :] = x_ref[0]
    return H, W, Cin


# ----------------------------------------------------------------------------
# Kernel A (small Cin): direct-write im2col into a preallocated scratch, then
# a single MXU matmul with K = 9*Cin.
# ----------------------------------------------------------------------------
def _repvgg_kernel_im2col(x_ref, w_ref, b_ref, o_ref, xpad_ref, patch_ref):
    # x_ref:     (1, H, W, Cin)        compute dtype
    # w_ref:     (9*Cin, tco)          compute dtype, rows ordered (dy, dx, ci)
    # b_ref:     (1, tco)              f32
    # o_ref:     (1, H, W, tco)        out dtype
    # xpad_ref:  (H+2, W+2, Cin)       compute-dtype halo scratch
    # patch_ref: (H, W, 9*Cin)         compute-dtype im2col scratch
    H, W, Cin = _fill_padded(x_ref, xpad_ref)

    for t in range(9):
        dy, dx = divmod(t, 3)
        patch_ref[:, :, t * Cin:(t + 1) * Cin] = xpad_ref[dy:dy + H, dx:dx + W, :]

    acc = lax.dot_general(patch_ref[...], w_ref[...],
                          dimension_numbers=(((2,), (0,)), ((), ())),
                          preferred_element_type=jnp.float32)   # (H, W, tco)

    out = jnp.maximum(acc + b_ref[0][None, None, :], 0.0)
    o_ref[0] = out.astype(o_ref.dtype)


# ----------------------------------------------------------------------------
# Kernel B (large Cin): nine accumulating dot_generals (K = Cin each), no
# im2col temporary at all.
# ----------------------------------------------------------------------------
def _repvgg_kernel_9dot(x_ref, w_ref, b_ref, o_ref, xpad_ref):
    # x_ref:    (1, H, W, Cin)         compute dtype
    # w_ref:    (9, Cin, tco)          compute dtype, taps ordered (dy, dx)
    # b_ref:    (1, tco)               f32
    # o_ref:    (1, H, W, tco)         out dtype
    # xpad_ref: (H+2, W+2, Cin)        compute-dtype halo scratch
    H, W, Cin = _fill_padded(x_ref, xpad_ref)
    tco = o_ref.shape[-1]

    acc = jnp.zeros((H, W, tco), jnp.float32)
    for t in range(9):
        dy, dx = divmod(t, 3)
        tap = xpad_ref[dy:dy + H, dx:dx + W, :]
        acc = acc + lax.dot_general(tap, w_ref[t],
                                    dimension_numbers=(((2,), (0,)), ((), ())),
                                    preferred_element_type=jnp.float32)

    out = jnp.maximum(acc + b_ref[0][None, None, :], 0.0)
    o_ref[0] = out.astype(o_ref.dtype)


# ----------------------------------------------------------------------------
# Wrapper
# ----------------------------------------------------------------------------
def repvgg_plus_block(x_nhwc, w_hwio, bias, *,
                      compute_dtype=jnp.bfloat16,
                      out_dtype=jnp.float32,
                      use_im2col=None):
    """Fused RepVGGplusBlock forward (stride=1, groups=1, no post-SE).

    x_nhwc: (N, H, W, Cin) float32
    w_hwio: (3, 3, Cin, Cout) fused re-parameterized weight
    bias:   (Cout,)           fused bias
    Returns (N, H, W, Cout) in `out_dtype`.
    """
    N, H, W, Cin = x_nhwc.shape
    kh, kw, wcin, Cout = w_hwio.shape
    assert (kh, kw, wcin) == (3, 3, Cin), "weight must be a (3,3,Cin,Cout) fused kernel"

    itemsize = jnp.dtype(compute_dtype).itemsize
    out_itemsize = jnp.dtype(out_dtype).itemsize

    # Path selection: im2col (one K=9*Cin matmul) only pays off when Cin does
    # not already fill the MXU K-depth and the im2col scratch is small.
    if use_im2col is None:
        use_im2col = (Cin < 256) and (H * W * 9 * Cin * itemsize <= (8 << 20))

    xpad_sc = (H + 2) * (W + 2) * Cin * itemsize
    patch_sc = H * W * 9 * Cin * itemsize if use_im2col else 0

    # Cout tiling: 256 preferred (v6e/v7x MXU is 256 wide), then 128 (v5e MXU
    # width), then full Cout; the largest candidate that fits the VMEM budget
    # (double-buffered I/O + halo + im2col scratch + f32 accumulator) wins.
    cands = [t for t in (256, 128) if Cout % t == 0] or [Cout]

    def _need(tco_):
        w_blk = 9 * Cin * tco_ * itemsize
        o_blk = H * W * tco_ * out_itemsize
        acc_tmp = H * W * tco_ * 4
        return (2 * (H * W * Cin * itemsize)            # x block, double-buffered
                + 2 * (w_blk + tco_ * 4 + o_blk)        # w / bias / out blocks
                + xpad_sc + patch_sc + acc_tmp)

    tco = cands[-1]
    for t in cands:
        if _need(t) <= (52 << 20):                      # headroom under v7x 64 MiB
            tco = t
            break
    n_ct = Cout // tco

    x_c = x_nhwc.astype(compute_dtype)
    b_c = bias.reshape(1, Cout).astype(jnp.float32)

    vmem_limit = int(min(64 * 2**20, max(16 * 2**20, _need(tco) + (4 << 20))))

    cost = pl.CostEstimate(
        flops=2 * N * H * W * 9 * Cin * Cout,
        transcendentals=0,
        bytes_accessed=(x_c.size * itemsize + 9 * Cin * Cout * itemsize
                        + Cout * 4 + N * H * W * Cout * out_itemsize))

    # Grid = (Cout tiles, batch): the weight block index depends only on the
    # OUTER axis, so it stays resident in VMEM across the whole batch loop.
    if use_im2col:
        kernel = _repvgg_kernel_im2col
        w_c = w_hwio.reshape(9 * Cin, Cout).astype(compute_dtype)
        w_spec = pl.BlockSpec((9 * Cin, tco), lambda c, n: (0, c))
        scratch = [pltpu.VMEM((H + 2, W + 2, Cin), compute_dtype),
                   pltpu.VMEM((H, W, 9 * Cin), compute_dtype)]
    else:
        kernel = _repvgg_kernel_9dot
        w_c = w_hwio.reshape(9, Cin, Cout).astype(compute_dtype)
        w_spec = pl.BlockSpec((9, Cin, tco), lambda c, n: (0, 0, c))
        scratch = [pltpu.VMEM((H + 2, W + 2, Cin), compute_dtype)]

    return pl.pallas_call(
        kernel,
        out_shape=jax.ShapeDtypeStruct((N, H, W, Cout), out_dtype),
        grid_spec=pltpu.PrefetchScalarGridSpec(
            num_scalar_prefetch=0,
            grid=(n_ct, N),
            in_specs=[
                pl.BlockSpec((1, H, W, Cin), lambda c, n: (n, 0, 0, 0)),
                w_spec,
                pl.BlockSpec((1, tco), lambda c, n: (0, c)),
            ],
            out_specs=pl.BlockSpec((1, H, W, tco), lambda c, n: (n, 0, 0, c)),
            scratch_shapes=scratch,
        ),
        compiler_params=pltpu.CompilerParams(
            dimension_semantics=("parallel", "parallel"),
            vmem_limit_bytes=vmem_limit),
        cost_estimate=cost,
    )(x_c, w_c, b_c)


# ----------------------------------------------------------------------------
# Parameter construction (synthetic, deterministic) + branch fusion
# ----------------------------------------------------------------------------
def make_params(key, in_channels, out_channels):
    """Synthetic per-branch parameters with BN folded per branch (eval mode)."""
    ks = jax.random.split(key, 12)
    f = jnp.float32

    # rbr_dense: conv3x3 (OIHW, no bias) + BN(eps=EPS)
    w3_oihw = jax.random.normal(ks[0], (out_channels, in_channels, 3, 3), f) * 0.1
    g3 = 1.0 + 0.1 * jax.random.normal(ks[1], (out_channels,), f)
    b3 = 0.1 * jax.random.normal(ks[2], (out_channels,), f)
    m3 = 0.05 * jax.random.normal(ks[3], (out_channels,), f)
    v3 = jax.random.uniform(ks[4], (out_channels,), f, 0.5, 1.5)

    # rbr_1x1: conv1x1 (OIHW, no bias) + BN(eps=EPS)
    w1_oihw = jax.random.normal(ks[5], (out_channels, in_channels, 1, 1), f) * 0.1
    g1 = 1.0 + 0.1 * jax.random.normal(ks[6], (out_channels,), f)
    b1 = 0.1 * jax.random.normal(ks[7], (out_channels,), f)
    m1 = 0.05 * jax.random.normal(ks[8], (out_channels,), f)
    v1 = jax.random.uniform(ks[9], (out_channels,), f, 0.5, 1.5)

    # rbr_identity: BatchNorm2d(out_channels), eps=1e-5, only when in==out, stride==1.
    gi = 1.0 + 0.1 * jax.random.normal(ks[10], (out_channels,), f)
    bi = 0.1 * jax.random.normal(ks[11], (out_channels,), f)
    mi = jnp.zeros((out_channels,), f)
    vi = jnp.ones((out_channels,), f)

    def fold(w_oihw, gamma, beta, mean, var, eps):
        std = jnp.sqrt(var + eps)
        t = gamma / std
        return w_oihw * t[:, None, None, None], beta - mean * t

    w3f, bias3 = fold(w3_oihw, g3, b3, m3, v3, EPS)
    w1f, bias1 = fold(w1_oihw, g1, b1, m1, v1, EPS)

    id_scale = gi / jnp.sqrt(vi + ID_EPS)
    id_shift = bi - mi * id_scale

    return {
        "w3": jnp.transpose(w3f, (2, 3, 1, 0)),            # (3,3,Cin,Cout) HWIO
        "w1": jnp.transpose(w1f[:, :, 0, 0], (1, 0)),      # (Cin,Cout)
        "b3": bias3.reshape(1, -1),
        "b1": bias1.reshape(1, -1),
        "id_scale": id_scale.reshape(1, -1),
        "id_shift": id_shift.reshape(1, -1),
        "has_identity": in_channels == out_channels,       # rbr_identity present?
    }


def fuse_params(params, in_channels, out_channels):
    """get_equivalent_kernel_bias: fold the three branches into one 3x3 conv."""
    w = params["w3"]                                       # (3,3,Cin,Cout)
    w = w.at[1, 1].add(params["w1"])                       # 1x1 branch -> center tap
    bias = params["b3"][0] + params["b1"][0]
    if params["has_identity"]:
        w = w.at[1, 1].add(
            jnp.eye(in_channels, out_channels, dtype=w.dtype)
            * params["id_scale"][0][None, :])
        bias = bias + params["id_shift"][0]
    return w, bias                                         # (3,3,Cin,Cout), (Cout,)


def reference_forward(x_nhwc, params):
    """Pure-JAX unfused 3-branch reference (same eval-mode BN folding)."""
    dn = ("NHWC", "HWIO", "NHWC")
    y3 = lax.conv_general_dilated(x_nhwc, params["w3"], (1, 1),
                                  padding=((1, 1), (1, 1)),
                                  dimension_numbers=dn) + params["b3"][0]
    w1 = params["w1"][None, None]
    y1 = lax.conv_general_dilated(x_nhwc, w1, (1, 1),
                                  padding=((0, 0), (0, 0)),
                                  dimension_numbers=dn) + params["b1"][0]
    out = y3 + y1
    if params["has_identity"]:
        out = out + x_nhwc * params["id_scale"][0] + params["id_shift"][0]
    return jnp.maximum(out, 0.0)


if __name__ == "__main__":
    # Shapes consistent with the module: N=2, C_in=C_out=4, H=W=16,
    # kernel_size=3, stride=1, padding=1, groups=1, deploy=False, use_post_se=False.
    N, C, H, W = 2, 4, 16, 16
    key = jax.random.PRNGKey(0)
    kx, kp = jax.random.split(key)

    x_nchw = jax.random.normal(kx, (N, C, H, W), jnp.float32)   # PyTorch-style input
    x_nhwc = jnp.transpose(x_nchw, (0, 2, 3, 1))                # kernel layout

    params = make_params(kp, C, C)
    w_hwio, bias = fuse_params(params, C, C)

    ref = reference_forward(x_nhwc, params)

    # f32 compute, im2col path: tight check vs. the unfused 3-branch reference.
    out_a = jax.block_until_ready(repvgg_plus_block(
        x_nhwc, w_hwio, bias, compute_dtype=jnp.float32,
        out_dtype=jnp.float32, use_im2col=True))
    assert jnp.allclose(out_a, ref, atol=1e-4, rtol=1e-4), "f32 im2col mismatch"

    # f32 compute, 9-dot path: tight check.
    out_b = jax.block_until_ready(repvgg_plus_block(
        x_nhwc, w_hwio, bias, compute_dtype=jnp.float32,
        out_dtype=jnp.float32, use_im2col=False))
    assert jnp.allclose(out_b, ref, atol=1e-4, rtol=1e-4), "f32 9-dot mismatch"

    # Default production path: bf16 compute + bf16 output (f32 MXU accumulation).
    out_bf16 = jax.block_until_ready(repvgg_plus_block(
        x_nhwc, w_hwio, bias, compute_dtype=jnp.bfloat16, out_dtype=jnp.bfloat16))
    assert jnp.allclose(out_bf16.astype(jnp.float32), ref,
                        atol=6e-2, rtol=6e-2), "bf16 mismatch vs reference"

    # Back to NCHW if the caller wants PyTorch layout.
    _ = jnp.transpose(out_bf16, (0, 3, 1, 2))

    print("KERNEL_OK")
</pallas_src>

<mosaic_0001>
module attributes {stable_mosaic.version = 11 : i64} {
  func.func @_repvgg_kernel_im2col(%arg0: i32, %arg1: i32, %arg2: memref<1x16x16x4xf32, #tpu.memory_space<vmem>>, %arg3: memref<36x4xf32, #tpu.memory_space<vmem>>, %arg4: memref<1x4xf32, #tpu.memory_space<vmem>>, %arg5: memref<1x16x16x4xf32, #tpu.memory_space<vmem>>, %arg6: memref<18x18x4xf32, #tpu.memory_space<vmem>>, %arg7: memref<16x16x36xf32, #tpu.memory_space<vmem>>) attributes {dimension_semantics = [#tpu.dimension_semantics<parallel>, #tpu.dimension_semantics<parallel>], iteration_bounds = array<i64: 1, 2>, scalar_prefetch = 0 : i64, scratch_operands = 2 : i64, tpu.core_type = #tpu.core_type<tc>, window_params = [{transform_indices = @transform_0, window_bounds = array<i64: 1, 16, 16, 4>}, {transform_indices = @transform_1, window_bounds = array<i64: 36, 4>}, {transform_indices = @transform_2, window_bounds = array<i64: 1, 4>}, {transform_indices = @transform_3, window_bounds = array<i64: 1, 16, 16, 4>}]} {
    %cst = arith.constant 0.000000e+00 : f32
    %0 = vector.broadcast %cst : f32 to vector<1x18x4xf32>
    %c0 = arith.constant 0 : index
    %c0_0 = arith.constant 0 : index
    %c0_1 = arith.constant 0 : index
    %1 = vector.load %arg6[%c0, %c0_0, %c0_1] : memref<18x18x4xf32, #tpu.memory_space<vmem>>, vector<1x18x4xf32>
    tpu.vector_store %arg6[%c0, %c0_0, %c0_1], %0 {strides = array<i32>} : memref<18x18x4xf32, #tpu.memory_space<vmem>>, vector<1x18x4xf32>,
    %cst_2 = arith.constant 0.000000e+00 : f32
    %2 = vector.broadcast %cst_2 : f32 to vector<1x18x4xf32>
    %c17 = arith.constant 17 : index
    %c0_3 = arith.constant 0 : index
    %c0_4 = arith.constant 0 : index
    %3 = vector.load %arg6[%c17, %c0_3, %c0_4] : memref<18x18x4xf32, #tpu.memory_space<vmem>>, vector<1x18x4xf32>
    tpu.vector_store %arg6[%c17, %c0_3, %c0_4], %2 {strides = array<i32>} : memref<18x18x4xf32, #tpu.memory_space<vmem>>, vector<1x18x4xf32>,
    %cst_5 = arith.constant 0.000000e+00 : f32
    %4 = vector.broadcast %cst_5 : f32 to vector<18x1x4xf32>
    %c0_6 = arith.constant 0 : index
    %c0_7 = arith.constant 0 : index
    %c0_8 = arith.constant 0 : index
    %5 = vector.load %arg6[%c0_6, %c0_7, %c0_8] : memref<18x18x4xf32, #tpu.memory_space<vmem>>, vector<18x1x4xf32>
    tpu.vector_store %arg6[%c0_6, %c0_7, %c0_8], %4 {strides = array<i32>} : memref<18x18x4xf32, #tpu.memory_space<vmem>>, vector<18x1x4xf32>,
    %cst_9 = arith.constant 0.000000e+00 : f32
    %6 = vector.broadcast %cst_9 : f32 to vector<18x1x4xf32>
    %c0_10 = arith.constant 0 : index
    %c17_11 = arith.constant 17 : index
    %c0_12 = arith.constant 0 : index
    %7 = vector.load %arg6[%c0_10, %c17_11, %c0_12] : memref<18x18x4xf32, #tpu.memory_space<vmem>>, vector<18x1x4xf32>
    tpu.vector_store %arg6[%c0_10, %c17_11, %c0_12], %6 {strides = array<i32>} : memref<18x18x4xf32, #tpu.memory_space<vmem>>, vector<18x1x4xf32>,
    %c0_13 = arith.constant 0 : index
    %c0_14 = arith.constant 0 : index
    %c0_15 = arith.constant 0 : index
    %c0_16 = arith.constant 0 : index
    %8 = vector.load %arg2[%c0_13, %c0_14, %c0_15, %c0_16] : memref<1x16x16x4xf32, #tpu.memory_space<vmem>>, vector<1x16x16x4xf32>
    %9 = vector.shape_cast %8 : vector<1x16x16x4xf32> to vector<16x16x4xf32>
    %c1 = arith.constant 1 : index
    %c1_17 = arith.constant 1 : index
    %c0_18 = arith.constant 0 : index
    %10 = vector.load %arg6[%c1, %c1_17, %c0_18] : memref<18x18x4xf32, #tpu.memory_space<vmem>>, vector<16x16x4xf32>
    tpu.vector_store %arg6[%c1, %c1_17, %c0_18], %9 {strides = array<i32>} : memref<18x18x4xf32, #tpu.memory_space<vmem>>, vector<16x16x4xf32>,
    %c0_19 = arith.constant 0 : index
    %c0_20 = arith.constant 0 : index
    %c0_21 = arith.constant 0 : index
    %11 = vector.load %arg6[%c0_19, %c0_20, %c0_21] : memref<18x18x4xf32, #tpu.memory_space<vmem>>, vector<16x16x4xf32>
    %c0_22 = arith.constant 0 : index
    %c0_23 = arith.constant 0 : index
    %c0_24 = arith.constant 0 : index
    %12 = vector.load %arg7[%c0_22, %c0_23, %c0_24] : memref<16x16x36xf32, #tpu.memory_space<vmem>>, vector<16x16x4xf32>
    tpu.vector_store %arg7[%c0_22, %c0_23, %c0_24], %11 {strides = array<i32>} : memref<16x16x36xf32, #tpu.memory_space<vmem>>, vector<16x16x4xf32>,
    %c0_25 = arith.constant 0 : index
    %c1_26 = arith.constant 1 : index
    %c0_27 = arith.constant 0 : index
    %13 = vector.load %arg6[%c0_25, %c1_26, %c0_27] : memref<18x18x4xf32, #tpu.memory_space<vmem>>, vector<16x16x4xf32>
    %c0_28 = arith.constant 0 : index
    %c0_29 = arith.constant 0 : index
    %c4 = arith.constant 4 : index
    %14 = vector.load %arg7[%c0_28, %c0_29, %c4] : memref<16x16x36xf32, #tpu.memory_space<vmem>>, vector<16x16x4xf32>
    tpu.vector_store %arg7[%c0_28, %c0_29, %c4], %13 {strides = array<i32>} : memref<16x16x36xf32, #tpu.memory_space<vmem>>, vector<16x16x4xf32>,
    %c0_30 = arith.constant 0 : index
    %c2 = arith.constant 2 : index
    %c0_31 = arith.constant 0 : index
    %15 = vector.load %arg6[%c0_30, %c2, %c0_31] : memref<18x18x4xf32, #tpu.memory_space<vmem>>, vector<16x16x4xf32>
    %c0_32 = arith.constant 0 : index
    %c0_33 = arith.constant 0 : index
    %c8 = arith.constant 8 : index
    %16 = vector.load %arg7[%c0_32, %c0_33, %c8] : memref<16x16x36xf32, #tpu.memory_space<vmem>>, vector<16x16x4xf32>
    tpu.vector_store %arg7[%c0_32, %c0_33, %c8], %15 {strides = array<i32>} : memref<16x16x36xf32, #tpu.memory_space<vmem>>, vector<16x16x4xf32>,
    %c1_34 = arith.constant 1 : index
    %c0_35 = arith.constant 0 : index
    %c0_36 = arith.constant 0 : index
    %17 = vector.load %arg6[%c1_34, %c0_35, %c0_36] : memref<18x18x4xf32, #tpu.memory_space<vmem>>, vector<16x16x4xf32>
    %c0_37 = arith.constant 0 : index
    %c0_38 = arith.constant 0 : index
    %c12 = arith.constant 12 : index
    %18 = vector.load %arg7[%c0_37, %c0_38, %c12] : memref<16x16x36xf32, #tpu.memory_space<vmem>>, vector<16x16x4xf32>
    tpu.vector_store %arg7[%c0_37, %c0_38, %c12], %17 {strides = array<i32>} : memref<16x16x36xf32, #tpu.memory_space<vmem>>, vector<16x16x4xf32>,
    %c1_39 = arith.constant 1 : index
    %c1_40 = arith.constant 1 : index
    %c0_41 = arith.constant 0 : index
    %19 = vector.load %arg6[%c1_39, %c1_40, %c0_41] : memref<18x18x4xf32, #tpu.memory_space<vmem>>, vector<16x16x4xf32>
    %c0_42 = arith.constant 0 : index
    %c0_43 = arith.constant 0 : index
    %c16 = arith.constant 16 : index
    %20 = vector.load %arg7[%c0_42, %c0_43, %c16] : memref<16x16x36xf32, #tpu.memory_space<vmem>>, vector<16x16x4xf32>
    tpu.vector_store %arg7[%c0_42, %c0_43, %c16], %19 {strides = array<i32>} : memref<16x16x36xf32, #tpu.memory_space<vmem>>, vector<16x16x4xf32>,
    %c1_44 = arith.constant 1 : index
    %c2_45 = arith.constant 2 : index
    %c0_46 = arith.constant 0 : index
    %21 = vector.load %arg6[%c1_44, %c2_45, %c0_46] : memref<18x18x4xf32, #tpu.memory_space<vmem>>, vector<16x16x4xf32>
    %c0_47 = arith.constant 0 : index
    %c0_48 = arith.constant 0 : index
    %c20 = arith.constant 20 : index
    %22 = vector.load %arg7[%c0_47, %c0_48, %c20] : memref<16x16x36xf32, #tpu.memory_space<vmem>>, vector<16x16x4xf32>
    tpu.vector_store %arg7[%c0_47, %c0_48, %c20], %21 {strides = array<i32>} : memref<16x16x36xf32, #tpu.memory_space<vmem>>, vector<16x16x4xf32>,
    %c2_49 = arith.constant 2 : index
    %c0_50 = arith.constant 0 : index
    %c0_51 = arith.constant 0 : index
    %23 = vector.load %arg6[%c2_49, %c0_50, %c0_51] : memref<18x18x4xf32, #tpu.memory_space<vmem>>, vector<16x16x4xf32>
    %c0_52 = arith.constant 0 : index
    %c0_53 = arith.constant 0 : index
    %c24 = arith.constant 24 : index
    %24 = vector.load %arg7[%c0_52, %c0_53, %c24] : memref<16x16x36xf32, #tpu.memory_space<vmem>>, vector<16x16x4xf32>
    tpu.vector_store %arg7[%c0_52, %c0_53, %c24], %23 {strides = array<i32>} : memref<16x16x36xf32, #tpu.memory_space<vmem>>, vector<16x16x4xf32>,
    %c2_54 = arith.constant 2 : index
    %c1_55 = arith.constant 1 : index
    %c0_56 = arith.constant 0 : index
    %25 = vector.load %arg6[%c2_54, %c1_55, %c0_56] : memref<18x18x4xf32, #tpu.memory_space<vmem>>, vector<16x16x4xf32>
    %c0_57 = arith.constant 0 : index
    %c0_58 = arith.constant 0 : index
    %c28 = arith.constant 28 : index
    %26 = vector.load %arg7[%c0_57, %c0_58, %c28] : memref<16x16x36xf32, #tpu.memory_space<vmem>>, vector<16x16x4xf32>
    tpu.vector_store %arg7[%c0_57, %c0_58, %c28], %25 {strides = array<i32>} : memref<16x16x36xf32, #tpu.memory_space<vmem>>, vector<16x16x4xf32>,
    %c2_59 = arith.constant 2 : index
    %c2_60 = arith.constant 2 : index
    %c0_61 = arith.constant 0 : index
    %27 = vector.load %arg6[%c2_59, %c2_60, %c0_61] : memref<18x18x4xf32, #tpu.memory_space<vmem>>, vector<16x16x4xf32>
    %c0_62 = arith.constant 0 : index
    %c0_63 = arith.constant 0 : index
    %c32 = arith.constant 32 : index
    %28 = vector.load %arg7[%c0_62, %c0_63, %c32] : memref<16x16x36xf32, #tpu.memory_space<vmem>>, vector<16x16x4xf32>
    tpu.vector_store %arg7[%c0_62, %c0_63, %c32], %27 {strides = array<i32>} : memref<16x16x36xf32, #tpu.memory_space<vmem>>, vector<16x16x4xf32>,
    %c0_64 = arith.constant 0 : index
    %c0_65 = arith.constant 0 : index
    %c0_66 = arith.constant 0 : index
    %29 = vector.load %arg7[%c0_64, %c0_65, %c0_66] : memref<16x16x36xf32, #tpu.memory_space<vmem>>, vector<16x16x36xf32>
    %c0_67 = arith.constant 0 : index
    %c0_68 = arith.constant 0 : index
    %30 = vector.load %arg3[%c0_67, %c0_68] : memref<36x4xf32, #tpu.memory_space<vmem>>, vector<36x4xf32>
    %cst_69 = arith.constant dense<0.000000e+00> : vector<16x16x4xf32>
    %31 = tpu.matmul %29, %30, %cst_69 {dimension_numbers = #tpu.dot_dimension_numbers<[2], [0], [0, 1], [1], [0, 0, 0, 1, 1, 1], [], []>} : vector<16x16x36xf32>, vector<36x4xf32>, vector<16x16x4xf32> -> vector<16x16x4xf32>
    %c0_70 = arith.constant 0 : index
    %c0_71 = arith.constant 0 : index
    %32 = vector.load %arg4[%c0_70, %c0_71] : memref<1x4xf32, #tpu.memory_space<vmem>>, vector<1x4xf32>
    %33 = vector.shape_cast %32 : vector<1x4xf32> to vector<4xf32>
    %34 = vector.shape_cast %33 : vector<4xf32> to vector<1x1x4xf32>
    %35 = vector.broadcast %34 : vector<1x1x4xf32> to vector<16x16x4xf32>
    %36 = arith.addf %31, %35 : vector<16x16x4xf32>
    %cst_72 = arith.constant 0.000000e+00 : f32
    %37 = vector.broadcast %cst_72 : f32 to vector<16x16x4xf32>
    %38 = arith.maximumf %36, %37 : vector<16x16x4xf32>
    %c0_73 = arith.constant 0 : index
    %c0_74 = arith.constant 0 : index
    %c0_75 = arith.constant 0 : index
    %c0_76 = arith.constant 0 : index
    %39 = vector.load %arg5[%c0_73, %c0_74, %c0_75, %c0_76] : memref<1x16x16x4xf32, #tpu.memory_space<vmem>>, vector<1x16x16x4xf32>
    %40 = vector.shape_cast %39 : vector<1x16x16x4xf32> to vector<16x16x4xf32>
    %41 = vector.shape_cast %38 : vector<16x16x4xf32> to vector<1x16x16x4xf32>
    tpu.vector_store %arg5[%c0_73, %c0_74, %c0_75, %c0_76], %41 {strides = array<i32>} : memref<1x16x16x4xf32, #tpu.memory_space<vmem>>, vector<1x16x16x4xf32>,
    return
  }
  func.func @transform_0(%arg0: i32, %arg1: i32) -> (i32, i32, i32, i32) {
    %c0_i32 = arith.constant 0 : i32
    %c0_i32_0 = arith.constant 0 : i32
    %c0_i32_1 = arith.constant 0 : i32
    %c0_i32_2 = arith.constant 0 : i32
    return %arg1, %c0_i32, %c0_i32_0, %c0_i32_1 : i32, i32, i32, i32
  }
  func.func @transform_1(%arg0: i32, %arg1: i32) -> (i32, i32) {
    %c0_i32 = arith.constant 0 : i32
    %c0_i32_0 = arith.constant 0 : i32
    return %c0_i32, %arg0 : i32, i32
  }
  func.func @transform_2(%arg0: i32, %arg1: i32) -> (i32, i32) {
    %c0_i32 = arith.constant 0 : i32
    %c0_i32_0 = arith.constant 0 : i32
    return %c0_i32, %arg0 : i32, i32
  }
  func.func @transform_3(%arg0: i32, %arg1: i32) -> (i32, i32, i32, i32) {
    %c0_i32 = arith.constant 0 : i32
    %c0_i32_0 = arith.constant 0 : i32
    %c0_i32_1 = arith.constant 0 : i32
    return %arg1, %c0_i32, %c0_i32_0, %arg0 : i32, i32, i32, i32
  }
}

</mosaic_0001>

<bundles_post_ra>
// kernel: tpu_custom_call.1
= control target key start
LH: loop header
LB: loop body
LE: loop exit
PB: predicated region body
PF: predicated region fallthrough
CT: control target
= control target key end

     0   :  { %s2516_s12 = smov 0   ;;  %s2518_s13 = smov 0   ;;  %s3752_s0 = inlined_call_operand.vmem [shape: f32[2,16,16,4], index: 0, kind: input, shape index: {}]   ;;  %s3753_s1 = inlined_call_operand.vmem [shape: f32[36,4], index: 1, kind: input, shape index: {}]   ;;  %s3754_s2 = inlined_call_operand.vmem [shape: f32[1,4], index: 2, kind: input, shape index: {}]   ;;  %s3755_s3 = inlined_call_operand.vmem [shape: f32[2,16,16,4], index: 3, kind: output, shape index: {}]  }
   0x1   :  { %s2520_s14 = smov 0  }
   0x2 LB: > { %s22_s15 = sadd.s32 1, %s2481_s13  ;;  %p2372_p0 = scmp.ge.s32.totalorder %s2485_s14, 1  ;;  %s2485_s14 = sphi %s2520_s14, %s13_s14   ;;  %s2481_s13 = sphi %s2518_s13, %s3847_s13   ;;  %s2477_s12 = sphi %s2516_s12, %s3846_s12  }
   0x3   : > { %p23_p1 = scmp.ge.s32.totalorder %s22_s15, 2  ;;  %p168_p2 = scmp.lt.s32.totalorder %s2485_s14, 3 }
   0x5   : > { %s3849_s15 = smov (%p23_p1, %s22_s15), 0  ;;  %p169_p3 = pnand %p2372_p0, %p168_p2 }
   0x7   : > { %172 = sbr.rel (%p169_p3) target bundleno = 987 (0x3db), region = 32 }
   0xc   : > { %vm222_vm0 = vcmask 31744   ;;  %v2487_v0 = vmov 0.0   ;;  %vm231_vm1 = vcmask 24576   ;;  %s2488_s16 = smov 4   ;;  %p202_p4 = scmp.lt.s32.totalorder %s2477_s12, 1  ;;  %vm225_vm2 = vcmask 25600  }
   0xd   : > { %223 = vst.msk [vmem:[#allocation2] sm:$0xff] %vm222_vm0, %v2487_v0  ;;  %vm557_vm3 = vcmask 64544   ;;  %s2489_s21 = smov 8   ;;  %s2490_s22 = smov 12   ;;  %vm750_vm4 = vcmask 97344   ;;  %vm943_vm5 = vcmask 130144  }
   0xe   : > { %224 = vst.msk [vmem:[#allocation2 + $0x8] sm:$0xff] %vm222_vm0, %v2487_v0  ;;  %s3851_s12 = smov (!%p202_p4, %s2477_s12), 1  ;;  %s2491_s23 = smov 16   ;;  %vm1136_vm6 = vcmask 162944   ;;  %vm1329_vm7 = vcmask 195744   ;;  %vm1523_vm8 = vcmask 228544  }
   0xf   : > { %232 = vst.msk [vmem:[#allocation2] sm:$0x1] %vm231_vm1, %v2487_v0  ;;  %s2412_s17 = sshll.u32 %s3851_s12, 8  ;;  %s2492_s24 = smov 20   ;;  %vm2080_vm9 = vcmask 1043456   ;;  %vm1716_vm10 = vcmask 261344  }
  0x10   : > { %228 = vst.msk [vmem:[#allocation2 + $0x198] sm:$0xff] %vm222_vm0, %v2487_v0  ;;  %s2579_s20 = scalar_lea.vmem %s3752_s0, %s2412_s17  ;;  %s2493_s25 = smov 24   ;;  %vm1909_vm11 = vcmask 294144   ;;  %vm1983_vm12 = vcmask 293888  }
  0x11   : > { %229 = vst.msk [vmem:[#allocation2 + $0x1a0] sm:$0xff] %vm222_vm0, %v2487_v0  ;;  %v268_v2 = vld [vmem:[%s2579_s20] sm:$0xff]  ;;  %v269_v3 = vld [vmem:[%s2579_s20 + $0x8] sm:$0xff]  ;;  %v275_v6 = vld [vmem:[%s2579_s20 + $0x38] sm:$0xff]  ;;  %s2494_s26 = smov 28   ;;  %s2495_s27 = smov 32  }
  0x12   : > { %233 = vst.msk [vmem:[#allocation2 + $0x18] sm:$0x1] %vm231_vm1, %v2487_v0  ;;  %v272_v4 = vld [vmem:[%s2579_s20 + $0x20] sm:$0xff]  ;;  %v273_v5 = vld [vmem:[%s2579_s20 + $0x28] sm:$0xff]  ;;  %v278_v9 = vld [vmem:[%s2579_s20 + $0x50] sm:$0xff] }
  0x13   : > { %234 = vst.msk [vmem:[#allocation2 + $0x30] sm:$0x1] %vm231_vm1, %v2487_v0  ;;  %v276_v8 = vld [vmem:[%s2579_s20 + $0x40] sm:$0xff]  ;;  %v270_v11 = vld [vmem:[%s2579_s20 + $0x10] sm:$0xff]  ;;  %v279_v12 = vld [vmem:[%s2579_s20 + $0x58] sm:$0xff] }
  0x14   : > { %235 = vst.msk [vmem:[#allocation2 + $0x48] sm:$0x1] %vm231_vm1, %v2487_v0  ;;  %v281_v13 = vld [vmem:[%s2579_s20 + $0x68] sm:$0xff]  ;;  %v271_v14 = vld [vmem:[%s2579_s20 + $0x18] sm:$0xff]  ;;  %v282_v16 = vld [vmem:[%s2579_s20 + $0x70] sm:$0xff] }
  0x15   : > { %v397_v1 = vld [vmem:[#allocation2 + $0x1] sm:$0xff]  ;;  %236 = vst.msk [vmem:[#allocation2 + $0x60] sm:$0x1] %vm231_vm1, %v2487_v0  ;;  %v274_v19 = vld [vmem:[%s2579_s20 + $0x30] sm:$0xff]  ;;  %v287_v21 = vld [vmem:[%s2579_s20 + $0x98] sm:$0xff] }
  0x16   : > { %461 = vrot.lane.b32.xlu0 %v397_v1, %s2488_s16  ;;  %237 = vst.msk [vmem:[#allocation2 + $0x78] sm:$0x1] %vm231_vm1, %v2487_v0  ;;  %v284_v17 = vld [vmem:[%s2579_s20 + $0x80] sm:$0xff]  ;;  %v285_v20 = vld [vmem:[%s2579_s20 + $0x88] sm:$0xff]  ;;  %v290_v28 = vld [vmem:[%s2579_s20 + $0xb0] sm:$0xff] }
  0x17   : > { %238 = vst.msk [vmem:[#allocation2 + $0x90] sm:$0x1] %vm231_vm1, %v2487_v0  ;;  %v277_v22 = vld [vmem:[%s2579_s20 + $0x48] sm:$0xff]  ;;  %v288_v26 = vld [vmem:[%s2579_s20 + $0xa0] sm:$0xff]  ;;  %v291_v32 = vld [vmem:[%s2579_s20 + $0xb8] sm:$0xff] }
  0x18   : > { %239 = vst.msk [vmem:[#allocation2 + $0xa8] sm:$0x1] %vm231_vm1, %v2487_v0  ;;  %v280_v29 = vld [vmem:[%s2579_s20 + $0x60] sm:$0xff]  ;;  %v293_v34 = vld [vmem:[%s2579_s20 + $0xc8] sm:$0xff]  ;;  %v283_v35 = vld [vmem:[%s2579_s20 + $0x78] sm:$0xff] }
  0x19   : > { %240 = vst.msk [vmem:[#allocation2 + $0xc0] sm:$0x1] %vm231_vm1, %v2487_v0  ;;  %v294_v38 = vld [vmem:[%s2579_s20 + $0xd0] sm:$0xff]  ;;  %v296_v40 = vld [vmem:[%s2579_s20 + $0xe0] sm:$0xff]  ;;  %v297_v44 = vld [vmem:[%s2579_s20 + $0xe8] sm:$0xff] }
  0x1a   : > { %241 = vst.msk [vmem:[#allocation2 + $0xd8] sm:$0x1] %vm231_vm1, %v2487_v0  ;;  %v286_v41 = vld [vmem:[%s2579_s20 + $0x90] sm:$0xff]  ;;  %v289_v46 = vld [vmem:[%s2579_s20 + $0xa8] sm:$0xff]  ;;  %v292_v50 = vld [vmem:[%s2579_s20 + $0xc0] sm:$0xff] }
  0x1b   : > { %242 = vst.msk [vmem:[#allocation2 + $0xf0] sm:$0x1] %vm231_vm1, %v2487_v0  ;;  %v295_v54 = vld [vmem:[%s2579_s20 + $0xd8] sm:$0xff]  ;;  %v333_v61 = vld [vmem:[#allocation2] sm:$0xff] }
  0x1c   : > { %243 = vst.msk [vmem:[#allocation2 + $0x108] sm:$0x1] %vm231_vm1, %v2487_v0 }
  0x1d   : > { %244 = vst.msk [vmem:[#allocation2 + $0x120] sm:$0x1] %vm231_vm1, %v2487_v0 }
  0x1e   : > { %245 = vst.msk [vmem:[#allocation2 + $0x138] sm:$0x1] %vm231_vm1, %v2487_v0 }
  0x1f   : > { %246 = vst.msk [vmem:[#allocation2 + $0x150] sm:$0x1] %vm231_vm1, %v2487_v0 }
  0x20   : > { %247 = vst.msk [vmem:[#allocation2 + $0x168] sm:$0x1] %vm231_vm1, %v2487_v0 }
  0x21   : > { %248 = vst.msk [vmem:[#allocation2 + $0x180] sm:$0x1] %vm231_vm1, %v2487_v0 }
  0x22   : > { %251 = vst.msk [vmem:[#allocation2 + $0x29] sm:$0x1] %vm231_vm1, %v2487_v0 }
  0x23   : > { %252 = vst.msk [vmem:[#allocation2 + $0x41] sm:$0x1] %vm231_vm1, %v2487_v0 }
  0x24   : > { %253 = vst.msk [vmem:[#allocation2 + $0x59] sm:$0x1] %vm231_vm1, %v2487_v0 }
  0x25   : > { %254 = vst.msk [vmem:[#allocation2 + $0x71] sm:$0x1] %vm231_vm1, %v2487_v0 }
  0x26   : > { %255 = vst.msk [vmem:[#allocation2 + $0x89] sm:$0x1] %vm231_vm1, %v2487_v0 }
  0x27   : > { %256 = vst.msk [vmem:[#allocation2 + $0xa1] sm:$0x1] %vm231_vm1, %v2487_v0 }
  0x28   : > { %257 = vst.msk [vmem:[#allocation2 + $0xb9] sm:$0x1] %vm231_vm1, %v2487_v0 }
  0x29   : > { %258 = vst.msk [vmem:[#allocation2 + $0xd1] sm:$0x1] %vm231_vm1, %v2487_v0 }
  0x2a   : > { %259 = vst.msk [vmem:[#allocation2 + $0xe9] sm:$0x1] %vm231_vm1, %v2487_v0 }
  0x2b   : > { %260 = vst.msk [vmem:[#allocation2 + $0x101] sm:$0x1] %vm231_vm1, %v2487_v0 }
  0x2c   : > { %261 = vst.msk [vmem:[#allocation2 + $0x119] sm:$0x1] %vm231_vm1, %v2487_v0 }
  0x2d   : > { %262 = vst.msk [vmem:[#allocation2 + $0x131] sm:$0x1] %vm231_vm1, %v2487_v0 }
  0x2e   : > { %263 = vst.msk [vmem:[#allocation2 + $0x149] sm:$0x1] %vm231_vm1, %v2487_v0 }
  0x2f   : > { %264 = vst.msk [vmem:[#allocation2 + $0x161] sm:$0x1] %vm231_vm1, %v2487_v0 }
  0x30   : > { %265 = vst.msk [vmem:[#allocation2 + $0x179] sm:$0x1] %vm231_vm1, %v2487_v0 }
  0x31   : > { %266 = vst.msk [vmem:[#allocation2 + $0x191] sm:$0x1] %vm231_vm1, %v2487_v0 }
  0x32   : > { %301 = vst.msk [vmem:[#allocation2 + $0x19] sm:$0xff] %vm222_vm0, %v268_v2 }
  0x33   : > { %249 = vst.msk [vmem:[#allocation2 + $0x198] sm:$0x1] %vm231_vm1, %v2487_v0 }
  0x34   : > { %226 = vst.msk [vmem:[#allocation2 + $0x10] sm:$0x3] %vm225_vm2, %v2487_v0 }
  0x35   : > { %230 = vst.msk [vmem:[#allocation2 + $0x1a8] sm:$0x3] %vm225_vm2, %v2487_v0 }
  0x36   : > { %250 = vst.msk [vmem:[#allocation2 + $0x11] sm:$0x1] %vm231_vm1, %v2487_v0 }
  0x37   : > { %302 = vst.msk [vmem:[#allocation2 + $0x21] sm:$0xff] %vm222_vm0, %v269_v3  ;;  %v334_v3 = vld [vmem:[#allocation2 + $0x8] sm:$0xff] }
  0x38   : > { %267 = vst.msk [vmem:[#allocation2 + $0x1a9] sm:$0x1] %vm231_vm1, %v2487_v0 }
  0x39   : > { %v2596_v7 = vld [vmem:[#allocation2 + $0x19] sm:$0xff]  ;;  %305 = vst.msk [vmem:[#allocation2 + $0x49] sm:$0xff] %vm222_vm0, %v272_v4 }
  0x3a   : > { %465 = vrot.lane.b32.xlu1 %v2596_v7, %s2488_s16  ;;  %306 = vst.msk [vmem:[#allocation2 + $0x51] sm:$0xff] %vm222_vm0, %v273_v5  ;;  %v2771_v2 = vld [vmem:[#allocation2 + $0x18] sm:$0xff] }
  0x3b   : > { %v398_v10 = vld [vmem:[#allocation2 + $0x9] sm:$0xff]  ;;  %308 = vst.msk [vmem:[#allocation2 + $0x69] sm:$0xff] %vm222_vm0, %v275_v6 }
  0x3c   : > { %463 = vrot.lane.b32.xlu0 %v398_v10, %s2488_s16  ;;  %309 = vst.msk [vmem:[#allocation2 + $0x79] sm:$0xff] %vm222_vm0, %v276_v8  ;;  %v590_v8 = vld [vmem:[#allocation2 + $0x2] sm:$0xff] }
  0x3d   : > { %311 = vst.msk [vmem:[#allocation2 + $0x91] sm:$0xff] %vm222_vm0, %v278_v9  ;;  %v591_v0 = vld [vmem:[#allocation2 + $0xa] sm:$0xff] }
  0x3e   : > { %303 = vst.msk [vmem:[#allocation2 + $0x31] sm:$0xff] %vm222_vm0, %v270_v11  ;;  %v2613_v15 = vld [vmem:[#allocation2 + $0x21] sm:$0xff] }
  0x3f   : > { %312 = vst.msk [vmem:[#allocation2 + $0x99] sm:$0xff] %vm222_vm0, %v279_v12  ;;  %v2780_v5 = vld [vmem:[#allocation2 + $0x1a] sm:$0xff] }
  0x40   : > { %314 = vst.msk [vmem:[#allocation2 + $0xb1] sm:$0xff] %vm222_vm0, %v281_v13  ;;  %v2619_v18 = vld [vmem:[#allocation2 + $0x49] sm:$0xff]  ;;  %v2790_v9 = vld [vmem:[#allocation2 + $0x20] sm:$0xff] }
  0x41   : > { %304 = vst.msk [vmem:[#allocation2 + $0x39] sm:$0xff] %vm222_vm0, %v271_v14  ;;  %v2639_v24 = vld [vmem:[#allocation2 + $0x51] sm:$0xff]  ;;  %v2794_v10 = vld [vmem:[#allocation2 + $0x48] sm:$0xff] }
  0x42   : > { %467 = vrot.lane.b32.xlu1 %v2613_v15, %s2488_s16  ;;  %315 = vst.msk [vmem:[#allocation2 + $0xc1] sm:$0xff] %vm222_vm0, %v282_v16  ;;  %v2642_v25 = vld [vmem:[#allocation2 + $0x69] sm:$0xff]  ;;  %v2805_v13 = vld [vmem:[#allocation2 + $0x52] sm:$0xff] }
  0x43   : > { %317 = vst.msk [vmem:[#allocation2 + $0xd9] sm:$0xff] %vm222_vm0, %v284_v17  ;;  %v2658_v30 = vld [vmem:[#allocation2 + $0x79] sm:$0xff]  ;;  %v2809_v14 = vld [vmem:[#allocation2 + $0x22] sm:$0xff]  ;;  %v2813_v16 = vld [vmem:[#allocation2 + $0x50] sm:$0xff] }
  0x44   : > { %473 = vrot.lane.b32.xlu0 %v2619_v18, %s2488_s16  ;;  %307 = vst.msk [vmem:[#allocation2 + $0x61] sm:$0xff] %vm222_vm0, %v274_v19  ;;  %v2660_v31 = vld [vmem:[#allocation2 + $0x91] sm:$0xff] }
  0x45   : > { %v2633_v23 = vld [vmem:[#allocation2 + $0x31] sm:$0xff]  ;;  %318 = vst.msk [vmem:[#allocation2 + $0xe1] sm:$0xff] %vm222_vm0, %v285_v20 }
  0x46   : > { %469 = vrot.lane.b32.xlu2 %v2633_v23, %s2488_s16  ;;  %320 = vst.msk [vmem:[#allocation2 + $0xf9] sm:$0xff] %vm222_vm0, %v287_v21  ;;  %v2676_v36 = vld [vmem:[#allocation2 + $0x99] sm:$0xff]  ;;  %v2775_v4 = vld [vmem:[#allocation2 + $0x30] sm:$0xff] }
  0x47   : > { %310 = vst.msk [vmem:[#allocation2 + $0x81] sm:$0xff] %vm222_vm0, %v277_v22  ;;  %v2678_v37 = vld [vmem:[#allocation2 + $0xb1] sm:$0xff] }
  0x48   : > { %v2647_v27 = vld [vmem:[#allocation2 + $0x39] sm:$0xff]  ;;  %321 = vst.msk [vmem:[#allocation2 + $0x109] sm:$0xff] %vm222_vm0, %v288_v26  ;;  %v2834_v26 = vld [vmem:[#allocation2 + $0x4a] sm:$0xff] }
  0x49   : > { %323 = vst.msk [vmem:[#allocation2 + $0x121] sm:$0xff] %vm222_vm0, %v290_v28  ;;  %v2694_v42 = vld [vmem:[#allocation2 + $0xc1] sm:$0xff]  ;;  %v2784_v6 = vld [vmem:[#allocation2 + $0x32] sm:$0xff] }
  0x4a   : > { %475 = vrot.lane.b32.xlu1 %v2639_v24, %s2488_s16  ;;  %313 = vst.msk [vmem:[#allocation2 + $0xa9] sm:$0xff] %vm222_vm0, %v280_v29  ;;  %v2696_v43 = vld [vmem:[#allocation2 + $0xd9] sm:$0xff]  ;;  %v2842_v29 = vld [vmem:[#allocation2 + $0x90] sm:$0xff] }
  0x4b   : > { %v2665_v33 = vld [vmem:[#allocation2 + $0x61] sm:$0xff]  ;;  %324 = vst.msk [vmem:[#allocation2 + $0x129] sm:$0xff] %vm222_vm0, %v291_v32  ;;  %v2796_v11 = vld [vmem:[#allocation2 + $0x38] sm:$0xff] }
  0x4c   : > { %479 = vrot.lane.b32.xlu0 %v2642_v25, %s2488_s16  ;;  %326 = vst.msk [vmem:[#allocation2 + $0x141] sm:$0xff] %vm222_vm0, %v293_v34  ;;  %v2710_v47 = vld [vmem:[#allocation2 + $0xe1] sm:$0xff]  ;;  %v2838_v28 = vld [vmem:[#allocation2 + $0x78] sm:$0xff] }
  0x4d   : > { %316 = vst.msk [vmem:[#allocation2 + $0xc9] sm:$0xff] %vm222_vm0, %v283_v35  ;;  %v2712_v48 = vld [vmem:[#allocation2 + $0xf9] sm:$0xff]  ;;  %v2817_v17 = vld [vmem:[#allocation2 + $0x68] sm:$0xff] }
  0x4e   : > { %471 = vrot.lane.b32.xlu2 %v2647_v27, %s2488_s16  ;;  %v2683_v39 = vld [vmem:[#allocation2 + $0x81] sm:$0xff]  ;;  %327 = vst.msk [vmem:[#allocation2 + $0x151] sm:$0xff] %vm222_vm0, %v294_v38 }
  0x4f   : > { %329 = vst.msk [vmem:[#allocation2 + $0x169] sm:$0xff] %vm222_vm0, %v296_v40  ;;  %v2724_v51 = vld [vmem:[#allocation2 + $0x109] sm:$0xff]  ;;  %v2801_v12 = vld [vmem:[#allocation2 + $0x3a] sm:$0xff] }
  0x50   : > { %319 = vst.msk [vmem:[#allocation2 + $0xf1] sm:$0xff] %vm222_vm0, %v286_v41  ;;  %v2726_v52 = vld [vmem:[#allocation2 + $0x121] sm:$0xff]  ;;  %v2859_v40 = vld [vmem:[#allocation2 + $0x6a] sm:$0xff] }
  0x51   : > { %v2701_v45 = vld [vmem:[#allocation2 + $0xa9] sm:$0xff]  ;;  %330 = vst.msk [vmem:[#allocation2 + $0x171] sm:$0xff] %vm222_vm0, %v297_v44  ;;  %v2819_v19 = vld [vmem:[#allocation2 + $0x60] sm:$0xff]  ;;  %v2863_v44 = vld [vmem:[#allocation2 + $0x98] sm:$0xff] }
  0x52   : > { %481 = vrot.lane.b32.xlu1 %v2658_v30, %s2488_s16  ;;  %322 = vst.msk [vmem:[#allocation2 + $0x111] sm:$0xff] %vm222_vm0, %v289_v46  ;;  %v2738_v55 = vld [vmem:[#allocation2 + $0x129] sm:$0xff]  ;;  %v2829_v22 = vld [vmem:[#allocation2 + $0x7a] sm:$0xff] }
  0x53   : > { %325 = vst.msk [vmem:[#allocation2 + $0x139] sm:$0xff] %vm222_vm0, %v292_v50  ;;  %v2740_v56 = vld [vmem:[#allocation2 + $0x141] sm:$0xff]  ;;  %v2866_v46 = vld [vmem:[#allocation2 + $0xb0] sm:$0xff] }
  0x54   : > { %485 = vrot.lane.b32.xlu0 %v2660_v31, %s2488_s16  ;;  %v2716_v49 = vld [vmem:[#allocation2 + $0xc9] sm:$0xff]  ;;  %328 = vst.msk [vmem:[#allocation2 + $0x159] sm:$0xff] %vm222_vm0, %v295_v54  ;;  %v2844_v32 = vld [vmem:[#allocation2 + $0x80] sm:$0xff] }
  0x55   : > { %v2750_v58 = vld [vmem:[#allocation2 + $0x151] sm:$0xff]  ;;  %365 = vst.msk [vmem:[#allocation3] sm:$0xff] %vm222_vm0, %v333_v61  ;;  %v2825_v20 = vld [vmem:[#allocation2 + $0x62] sm:$0xff]  ;;  %v2854_v38 = vld [vmem:[#allocation2 + $0x9a] sm:$0xff] }
  0x56   : > { %477 = vrot.lane.b32.xlu2 %v2665_v33, %s2488_s16  ;;  %3786 = vst [vmem:[#allocation4_spill] sm:$0xff] %v2750_v58  ;;  %v2752_v59 = vld [vmem:[#allocation2 + $0x169] sm:$0xff] }
  0x57   : > { %v2730_v53 = vld [vmem:[#allocation2 + $0xf1] sm:$0xff]  ;;  %367 = vst.msk [vmem:[#allocation3 + $0x10] sm:$0xff] %vm222_vm0, %v2771_v2  ;;  %v2850_v34 = vld [vmem:[#allocation2 + $0x82] sm:$0xff] }
  0x58   : > { %v2763_v62 = vld [vmem:[#allocation2 + $0x171] sm:$0xff]  ;;  %366 = vst.msk [vmem:[#allocation3 + $0x8] sm:$0xff] %vm222_vm0, %v334_v3  ;;  %v2875_v61 = vld [vmem:[#allocation2 + $0xa8] sm:$0xff] }
  0x59   : > { %v2744_v57 = vld [vmem:[#allocation2 + $0x111] sm:$0xff]  ;;  %3787 = vst [vmem:[#allocation5_spill] sm:$0xff] %v2763_v62 }
  0x5a   : > { %487 = vrot.lane.b32.xlu1 %v2676_v36, %s2488_s16  ;;  %v2756_v60 = vld [vmem:[#allocation2 + $0x139] sm:$0xff]  ;;  %3788 = vst [vmem:[#allocation6_spill] sm:$0xff] %v2780_v5  ;;  %v2873_v54 = vld [vmem:[#allocation2 + $0xaa] sm:$0xff] }
  0x5b   : > { %v2768_v1 = vld [vmem:[#allocation2 + $0x159] sm:$0xff]  ;;  %369 = vst.msk [vmem:[#allocation3 + $0x20] sm:$0xff] %vm222_vm0, %v2775_v4 }
  0x5c   : > { %491 = vrot.lane.b32.xlu0 %v2678_v37, %s2488_s16  ;;  %3789 = vst [vmem:[#allocation7_spill] sm:$0xff] %v2784_v6  ;;  %v2886_v3 = vld [vmem:[#allocation2 + $0x92] sm:$0xff] }
  0x5d   : > { %368 = vst.msk [vmem:[#allocation3 + $0x18] sm:$0xff] %vm222_vm0, %v2790_v9 }
  0x5e   : > { %483 = vrot.lane.b32.xlu2 %v2683_v39, %s2488_s16  ;;  %371 = vst.msk [vmem:[#allocation3 + $0x30] sm:$0xff] %vm222_vm0, %v2794_v10 }
  0x5f   : > { %3790 = vst [vmem:[#allocation8_spill] sm:$0xff] %v2801_v12 }
  0x60   : > { %370 = vst.msk [vmem:[#allocation3 + $0x28] sm:$0xff] %vm222_vm0, %v2796_v11 }
  0x61   : > { %3791 = vst [vmem:[#allocation9_spill] sm:$0xff] %v2805_v13 }
  0x62   : > { %493 = vrot.lane.b32.xlu1 %v2694_v42, %s2488_s16  ;;  %3792 = vst [vmem:[#allocation10_spill] sm:$0xff] %v2809_v14 }
  0x63   : > { %372 = vst.msk [vmem:[#allocation3 + $0x38] sm:$0xff] %vm222_vm0, %v2813_v16 }
  0x64   : > { %497 = vrot.lane.b32.xlu0 %v2696_v43, %s2488_s16  ;;  %374 = vst.msk [vmem:[#allocation3 + $0x48] sm:$0xff] %vm222_vm0, %v2817_v17 }
  0x65   : > { %3793 = vst [vmem:[#allocation11_spill] sm:$0xff] %v2825_v20 }
  0x66   : > { %489 = vrot.lane.b32.xlu2 %v2701_v45, %s2488_s16  ;;  %373 = vst.msk [vmem:[#allocation3 + $0x40] sm:$0xff] %vm222_vm0, %v2819_v19 }
  0x67   : > { %3794 = vst [vmem:[#allocation12_spill] sm:$0xff] %v2829_v22 }
  0x68   : > { %3795 = vst [vmem:[#allocation13_spill] sm:$0xff] %v2834_v26 }
  0x69   : > { %375 = vst.msk [vmem:[#allocation3 + $0x50] sm:$0xff] %vm222_vm0, %v2838_v28 }
  0x6a   : > { %499 = vrot.lane.b32.xlu1 %v2710_v47, %s2488_s16  ;;  %377 = vst.msk [vmem:[#allocation3 + $0x60] sm:$0xff] %vm222_vm0, %v2842_v29 }
  0x6b   : > { %3796 = vst [vmem:[#allocation14_spill] sm:$0xff] %v2850_v34 }
  0x6c   : > { %503 = vrot.lane.b32.xlu0 %v2712_v48, %s2488_s16  ;;  %376 = vst.msk [vmem:[#allocation3 + $0x58] sm:$0xff] %vm222_vm0, %v2844_v32 }
  0x6d   : > { %3797 = vst [vmem:[#allocation15_spill] sm:$0xff] %v2854_v38 }
  0x6e   : > { %495 = vrot.lane.b32.xlu2 %v2716_v49, %s2488_s16  ;;  %3798 = vst [vmem:[#allocation16_spill] sm:$0xff] %v2859_v40 }
  0x6f   : > { %378 = vst.msk [vmem:[#allocation3 + $0x68] sm:$0xff] %vm222_vm0, %v2863_v44 }
  0x70   : > { %3799 = vst [vmem:[#allocation17_spill] sm:$0xff] %v2873_v54 }
  0x71   : > { %380 = vst.msk [vmem:[#allocation3 + $0x78] sm:$0xff] %vm222_vm0, %v2866_v46 }
  0x72   : > { %505 = vrot.lane.b32.xlu1 %v2724_v51, %s2488_s16  ;;  %379 = vst.msk [vmem:[#allocation3 + $0x70] sm:$0xff] %vm222_vm0, %v2875_v61 }
  0x73   : > { %3801 = vst [vmem:[#allocation19_spill] sm:$0xff] %v2886_v3 }
  0x74   : > { %509 = vrot.lane.b32.xlu0 %v2726_v52, %s2488_s16 }
  0x76   : > { %501 = vrot.lane.b32.xlu2 %v2730_v53, %s2488_s16 }
  0x7a   : > { %511 = vrot.lane.b32.xlu1 %v2738_v55, %s2488_s16 }
  0x7c   : > { %515 = vrot.lane.b32.xlu0 %v2740_v56, %s2488_s16 }
  0x7e   : > { %507 = vrot.lane.b32.xlu2 %v2744_v57, %s2488_s16 }
  0x82   : > { %517 = vrot.lane.b32.xlu1 %v2750_v58, %s2488_s16 }
  0x84   : > { %521 = vrot.lane.b32.xlu0 %v2752_v59, %s2488_s16 }
  0x86   : > { %513 = vrot.lane.b32.xlu2 %v2756_v60, %s2488_s16 }
  0x88   : > { %v462_v63 = vpop.permute.xlu0 %461 }
  0x89   : > { %558 = vst.msk [vmem:[#allocation3] sm:$0xff] %vm557_vm3, %v462_v63 }
  0x8a   : > { %523 = vrot.lane.b32.xlu1 %v2763_v62, %s2488_s16 }
  0x8c   : > { %656 = vrot.lane.b32.xlu0 %v591_v0, %s2489_s21  ;;  %v2879_v0 = vld [vmem:[#allocation2 + $0xc2] sm:$0xff] }
  0x8d   : > { %3800 = vst [vmem:[#allocation18_spill] sm:$0xff] %v2879_v0 }
  0x8e   : > { %519 = vrot.lane.b32.xlu2 %v2768_v1, %s2488_s16 }
  0x92   : > { %658 = vrot.lane.b32.xlu1 %v2780_v5, %s2489_s21 }
  0x94   : > { %662 = vrot.lane.b32.xlu0 %v2784_v6, %s2489_s21  ;;  %v3001_v6 = vld [vmem:[#allocation2 + $0x168] sm:$0xff] }
  0x95   : > { %395 = vst.msk [vmem:[#allocation3 + $0xf0] sm:$0xff] %vm222_vm0, %v3001_v6 }
  0x96   : > { %654 = vrot.lane.b32.xlu2 %v590_v8, %s2489_s21 }
  0x9a   : > { %664 = vrot.lane.b32.xlu1 %v2801_v12, %s2489_s21 }
  0x9c   : > { %668 = vrot.lane.b32.xlu0 %v2805_v13, %s2489_s21  ;;  %v2974_v13 = vld [vmem:[#allocation2 + $0x140] sm:$0xff] }
  0x9d   : > { %392 = vst.msk [vmem:[#allocation3 + $0xd8] sm:$0xff] %vm222_vm0, %v2974_v13 }
  0x9e   : > { %660 = vrot.lane.b32.xlu2 %v2809_v14, %s2489_s21  ;;  %v3025_v14 = vld [vmem:[#allocation2 + $0x170] sm:$0xff] }
  0x9f   : > { %396 = vst.msk [vmem:[#allocation3 + $0xf8] sm:$0xff] %vm222_vm0, %v3025_v14 }
  0xa0   : > { %v470_v21 = vpop.permute.xlu2 %469 }
  0xa1   : > { %562 = vst.msk [vmem:[#allocation3 + $0x20] sm:$0xff] %vm557_vm3, %v470_v21  ;;  %v2890_v21 = vld [vmem:[#allocation2 + $0xc0] sm:$0xff] }
  0xa2   : > { %670 = vrot.lane.b32.xlu1 %v2825_v20, %s2489_s21  ;;  %381 = vst.msk [vmem:[#allocation3 + $0x80] sm:$0xff] %vm222_vm0, %v2890_v21 }
  0xa4   : > { %674 = vrot.lane.b32.xlu0 %v2829_v22, %s2489_s21  ;;  %v2947_v22 = vld [vmem:[#allocation2 + $0x120] sm:$0xff] }
  0xa5   : > { %389 = vst.msk [vmem:[#allocation3 + $0xc0] sm:$0xff] %vm222_vm0, %v2947_v22 }
  0xa6   : > { %666 = vrot.lane.b32.xlu2 %v2834_v26, %s2489_s21  ;;  %v2998_v26 = vld [vmem:[#allocation2 + $0x150] sm:$0xff] }
  0xa7   : > { %393 = vst.msk [vmem:[#allocation3 + $0xe0] sm:$0xff] %vm222_vm0, %v2998_v26 }
  0xa8   : > { %v472_v35 = vpop.permute.xlu2 %471 }
  0xa9   : > { %563 = vst.msk [vmem:[#allocation3 + $0x28] sm:$0xff] %vm557_vm3, %v472_v35  ;;  %v2893_v35 = vld [vmem:[#allocation2 + $0xd8] sm:$0xff] }
  0xaa   : > { %676 = vrot.lane.b32.xlu1 %v2850_v34, %s2489_s21  ;;  %383 = vst.msk [vmem:[#allocation3 + $0x90] sm:$0xff] %vm222_vm0, %v2893_v35  ;;  %v2917_v34 = vld [vmem:[#allocation2 + $0xe0] sm:$0xff] }
  0xab   : > { %384 = vst.msk [vmem:[#allocation3 + $0x98] sm:$0xff] %vm222_vm0, %v2917_v34 }
  0xac   : > { %680 = vrot.lane.b32.xlu0 %v2854_v38, %s2489_s21  ;;  %v466_v41 = vpop.permute.xlu1 %465  ;;  %v2920_v38 = vld [vmem:[#allocation2 + $0xf8] sm:$0xff] }
  0xad   : > { %560 = vst.msk [vmem:[#allocation3 + $0x10] sm:$0xff] %vm557_vm3, %v466_v41 }
  0xae   : > { %v464_v50 = vpop.permute.xlu0 %463  ;;  %672 = vrot.lane.b32.xlu2 %v2859_v40, %s2489_s21  ;;  %386 = vst.msk [vmem:[#allocation3 + $0xa8] sm:$0xff] %vm222_vm0, %v2920_v38  ;;  %v2971_v40 = vld [vmem:[#allocation2 + $0x128] sm:$0xff] }
  0xaf   : > { %559 = vst.msk [vmem:[#allocation3 + $0x8] sm:$0xff] %vm557_vm3, %v464_v50  ;;  %v2900_v50 = vld [vmem:[#allocation2 + $0xca] sm:$0xff] }
  0xb0   : > { %v478_v63 = vpop.permute.xlu2 %477  ;;  %3802 = vst [vmem:[#allocation20_spill] sm:$0xff] %v2900_v50 }
  0xb1   : > { %566 = vst.msk [vmem:[#allocation3 + $0x40] sm:$0xff] %vm557_vm3, %v478_v63  ;;  %v2902_v63 = vld [vmem:[#allocation2 + $0xc8] sm:$0xff] }
  0xb2   : > { %682 = vrot.lane.b32.xlu1 %v2873_v54, %s2489_s21  ;;  %382 = vst.msk [vmem:[#allocation3 + $0x88] sm:$0xff] %vm222_vm0, %v2902_v63 }
  0xb3   : > { %390 = vst.msk [vmem:[#allocation3 + $0xc8] sm:$0xff] %vm222_vm0, %v2971_v40 }
  0xb4   : > { %686 = vrot.lane.b32.xlu0 %v2879_v0, %s2489_s21  ;;  %v468_v8 = vpop.permute.xlu1 %467  ;;  %v2913_v0 = vld [vmem:[#allocation2 + $0xb2] sm:$0xff] }
  0xb5   : > { %561 = vst.msk [vmem:[#allocation3 + $0x18] sm:$0xff] %vm557_vm3, %v468_v8  ;;  %v2906_v8 = vld [vmem:[#allocation2 + $0xe2] sm:$0xff] }
  0xb6   : > { %v474_v41 = vpop.permute.xlu0 %473  ;;  %678 = vrot.lane.b32.xlu2 %v2886_v3, %s2489_s21  ;;  %3803 = vst [vmem:[#allocation21_spill] sm:$0xff] %v2906_v8  ;;  %v2944_v3 = vld [vmem:[#allocation2 + $0x108] sm:$0xff] }
  0xb7   : > { %564 = vst.msk [vmem:[#allocation3 + $0x30] sm:$0xff] %vm557_vm3, %v474_v41 }
  0xb8   : > { %v484_v54 = vpop.permute.xlu2 %483  ;;  %3804 = vst [vmem:[#allocation22_spill] sm:$0xff] %v2913_v0 }
  0xb9   : > { %569 = vst.msk [vmem:[#allocation3 + $0x58] sm:$0xff] %vm557_vm3, %v484_v54  ;;  %v2927_v54 = vld [vmem:[#allocation2 + $0xf2] sm:$0xff] }
  0xba   : > { %688 = vrot.lane.b32.xlu1 %v2900_v50, %s2489_s21  ;;  %3805 = vst [vmem:[#allocation23_spill] sm:$0xff] %v2927_v54  ;;  %v2929_v50 = vld [vmem:[#allocation2 + $0xf0] sm:$0xff] }
  0xbb   : > { %385 = vst.msk [vmem:[#allocation3 + $0xa0] sm:$0xff] %vm222_vm0, %v2929_v50 }
  0xbc   : > { %692 = vrot.lane.b32.xlu0 %v2906_v8, %s2489_s21  ;;  %v476_v41 = vpop.permute.xlu1 %475  ;;  %387 = vst.msk [vmem:[#allocation3 + $0xb0] sm:$0xff] %vm222_vm0, %v2944_v3 }
  0xbd   : > { %565 = vst.msk [vmem:[#allocation3 + $0x38] sm:$0xff] %vm557_vm3, %v476_v41  ;;  %v2933_v41 = vld [vmem:[#allocation2 + $0x10a] sm:$0xff] }
  0xbe   : > { %v480_v20 = vpop.permute.xlu0 %479  ;;  %684 = vrot.lane.b32.xlu2 %v2913_v0, %s2489_s21  ;;  %3806 = vst [vmem:[#allocation24_spill] sm:$0xff] %v2933_v41  ;;  %v2940_v0 = vld [vmem:[#allocation2 + $0xda] sm:$0xff] }
  0xbf   : > { %567 = vst.msk [vmem:[#allocation3 + $0x48] sm:$0xff] %vm557_vm3, %v480_v20 }
  0xc0   : > { %v490_v8 = vpop.permute.xlu2 %489  ;;  %3807 = vst [vmem:[#allocation25_spill] sm:$0xff] %v2940_v0 }
  0xc1   : > { %572 = vst.msk [vmem:[#allocation3 + $0x70] sm:$0xff] %vm557_vm3, %v490_v8  ;;  %v2954_v8 = vld [vmem:[#allocation2 + $0x112] sm:$0xff] }
  0xc2   : > { %694 = vrot.lane.b32.xlu1 %v2927_v54, %s2489_s21  ;;  %3808 = vst [vmem:[#allocation26_spill] sm:$0xff] %v2954_v8  ;;  %v2956_v54 = vld [vmem:[#allocation2 + $0x110] sm:$0xff] }
  0xc3   : > { %388 = vst.msk [vmem:[#allocation3 + $0xb8] sm:$0xff] %vm222_vm0, %v2956_v54 }
  0xc4   : > { %698 = vrot.lane.b32.xlu0 %v2933_v41, %s2489_s21  ;;  %v482_v20 = vpop.permute.xlu1 %481 }
  0xc5   : > { %568 = vst.msk [vmem:[#allocation3 + $0x50] sm:$0xff] %vm557_vm3, %v482_v20  ;;  %v2960_v20 = vld [vmem:[#allocation2 + $0x12a] sm:$0xff] }
  0xc6   : > { %v486_v12 = vpop.permute.xlu0 %485  ;;  %690 = vrot.lane.b32.xlu2 %v2940_v0, %s2489_s21  ;;  %3809 = vst [vmem:[#allocation27_spill] sm:$0xff] %v2960_v20  ;;  %v2967_v0 = vld [vmem:[#allocation2 + $0xfa] sm:$0xff] }
  0xc7   : > { %570 = vst.msk [vmem:[#allocation3 + $0x60] sm:$0xff] %vm557_vm3, %v486_v12 }
  0xc8   : > { %v496_v41 = vpop.permute.xlu2 %495  ;;  %3810 = vst [vmem:[#allocation28_spill] sm:$0xff] %v2967_v0 }
  0xc9   : > { %575 = vst.msk [vmem:[#allocation3 + $0x88] sm:$0xff] %vm557_vm3, %v496_v41  ;;  %v2981_v41 = vld [vmem:[#allocation2 + $0x13a] sm:$0xff] }
  0xca   : > { %700 = vrot.lane.b32.xlu1 %v2954_v8, %s2489_s21  ;;  %3811 = vst [vmem:[#allocation29_spill] sm:$0xff] %v2981_v41  ;;  %v2983_v8 = vld [vmem:[#allocation2 + $0x138] sm:$0xff] }
  0xcb   : > { %391 = vst.msk [vmem:[#allocation3 + $0xd0] sm:$0xff] %vm222_vm0, %v2983_v8 }
  0xcc   : > { %704 = vrot.lane.b32.xlu0 %v2960_v20, %s2489_s21  ;;  %v488_v12 = vpop.permute.xlu1 %487 }
  0xcd   : > { %571 = vst.msk [vmem:[#allocation3 + $0x68] sm:$0xff] %vm557_vm3, %v488_v12  ;;  %v2987_v12 = vld [vmem:[#allocation2 + $0x152] sm:$0xff] }
  0xce   : > { %v492_v5 = vpop.permute.xlu0 %491  ;;  %696 = vrot.lane.b32.xlu2 %v2967_v0, %s2489_s21  ;;  %3812 = vst [vmem:[#allocation30_spill] sm:$0xff] %v2987_v12  ;;  %v2994_v0 = vld [vmem:[#allocation2 + $0x122] sm:$0xff] }
  0xcf   : > { %573 = vst.msk [vmem:[#allocation3 + $0x78] sm:$0xff] %vm557_vm3, %v492_v5 }
  0xd0   : > { %v502_v20 = vpop.permute.xlu2 %501  ;;  %3813 = vst [vmem:[#allocation31_spill] sm:$0xff] %v2994_v0 }
  0xd1   : > { %578 = vst.msk [vmem:[#allocation3 + $0xa0] sm:$0xff] %vm557_vm3, %v502_v20  ;;  %v3008_v20 = vld [vmem:[#allocation2 + $0x15a] sm:$0xff] }
  0xd2   : > { %706 = vrot.lane.b32.xlu1 %v2981_v41, %s2489_s21  ;;  %3814 = vst [vmem:[#allocation32_spill] sm:$0xff] %v3008_v20  ;;  %v3010_v41 = vld [vmem:[#allocation2 + $0x158] sm:$0xff] }
  0xd3   : > { %394 = vst.msk [vmem:[#allocation3 + $0xe8] sm:$0xff] %vm222_vm0, %v3010_v41 }
  0xd4   : > { %710 = vrot.lane.b32.xlu0 %v2987_v12, %s2489_s21  ;;  %v494_v5 = vpop.permute.xlu1 %493 }
  0xd5   : > { %574 = vst.msk [vmem:[#allocation3 + $0x80] sm:$0xff] %vm557_vm3, %v494_v5  ;;  %v3014_v5 = vld [vmem:[#allocation2 + $0x172] sm:$0xff] }
  0xd6   : > { %v498_v62 = vpop.permute.xlu0 %497  ;;  %702 = vrot.lane.b32.xlu2 %v2994_v0, %s2489_s21  ;;  %3815 = vst [vmem:[#allocation33_spill] sm:$0xff] %v3014_v5  ;;  %v3021_v0 = vld [vmem:[#allocation2 + $0x142] sm:$0xff] }
  0xd7   : > { %576 = vst.msk [vmem:[#allocation3 + $0x90] sm:$0xff] %vm557_vm3, %v498_v62 }
  0xd8   : > { %v508_v12 = vpop.permute.xlu2 %507 }
  0xd9   : > { %581 = vst.msk [vmem:[#allocation3 + $0xb8] sm:$0xff] %vm557_vm3, %v508_v12 }
  0xda   : > { %712 = vrot.lane.b32.xlu1 %v3008_v20, %s2489_s21  ;;  %v3036_v20 = vld [vmem:[#allocation2 + $0x16a] sm:$0xff] }
  0xdc   : > { %716 = vrot.lane.b32.xlu0 %v3014_v5, %s2489_s21  ;;  %v500_v62 = vpop.permute.xlu1 %499 }
  0xdd   : > { %577 = vst.msk [vmem:[#allocation3 + $0x98] sm:$0xff] %vm557_vm3, %v500_v62 }
  0xde   : > { %v504_v58 = vpop.permute.xlu0 %503  ;;  %708 = vrot.lane.b32.xlu2 %v3021_v0, %s2489_s21 }
  0xdf   : > { %579 = vst.msk [vmem:[#allocation3 + $0xa8] sm:$0xff] %vm557_vm3, %v504_v58 }
  0xe0   : > { %v514_v12 = vpop.permute.xlu2 %513 }
  0xe1   : > { %584 = vst.msk [vmem:[#allocation3 + $0xd0] sm:$0xff] %vm557_vm3, %v514_v12 }
  0xe2   : > { %847 = vrot.lane.b32.xlu1 %v2771_v2, %s2490_s22 }
  0xe4   : > { %851 = vrot.lane.b32.xlu0 %v2775_v4, %s2490_s22  ;;  %v506_v62 = vpop.permute.xlu1 %505 }
  0xe5   : > { %580 = vst.msk [vmem:[#allocation3 + $0xb0] sm:$0xff] %vm557_vm3, %v506_v62 }
  0xe6   : > { %v510_v5 = vpop.permute.xlu0 %509  ;;  %714 = vrot.lane.b32.xlu2 %v3036_v20, %s2489_s21 }
  0xe7   : > { %582 = vst.msk [vmem:[#allocation3 + $0xc0] sm:$0xff] %vm557_vm3, %v510_v5 }
  0xe8   : > { %v520_v58 = vpop.permute.xlu2 %519 }
  0xe9   : > { %587 = vst.msk [vmem:[#allocation3 + $0xe8] sm:$0xff] %vm557_vm3, %v520_v58 }
  0xea   : > { %853 = vrot.lane.b32.xlu1 %v2796_v11, %s2490_s22 }
  0xec   : > { %857 = vrot.lane.b32.xlu0 %v2813_v16, %s2490_s22  ;;  %v512_v2 = vpop.permute.xlu1 %511 }
  0xed   : > { %583 = vst.msk [vmem:[#allocation3 + $0xc8] sm:$0xff] %vm557_vm3, %v512_v2 }
  0xee   : > { %v516_v4 = vpop.permute.xlu0 %515  ;;  %849 = vrot.lane.b32.xlu2 %v2790_v9, %s2490_s22 }
  0xef   : > { %585 = vst.msk [vmem:[#allocation3 + $0xd8] sm:$0xff] %vm557_vm3, %v516_v4  ;;  %v298_v4 = vld [vmem:[%s2579_s20 + $0xf0] sm:$0xff] }
  0xf0   : > { %v655_v5 = vpop.permute.xlu2 %654  ;;  %331 = vst.msk [vmem:[#allocation2 + $0x181] sm:$0xff] %vm222_vm0, %v298_v4 }
  0xf1   : > { %751 = vst.msk [vmem:[#allocation3] sm:$0xff] %vm750_vm4, %v655_v5 }
  0xf2   : > { %859 = vrot.lane.b32.xlu1 %v2819_v19, %s2490_s22 }
  0xf4   : > { %863 = vrot.lane.b32.xlu0 %v2838_v28, %s2490_s22  ;;  %v518_v11 = vpop.permute.xlu1 %517 }
  0xf5   : > { %586 = vst.msk [vmem:[#allocation3 + $0xe0] sm:$0xff] %vm557_vm3, %v518_v11 }
  0xf6   : > { %v522_v12 = vpop.permute.xlu0 %521  ;;  %855 = vrot.lane.b32.xlu2 %v2794_v10, %s2490_s22 }
  0xf7   : > { %588 = vst.msk [vmem:[#allocation3 + $0xf0] sm:$0xff] %vm557_vm3, %v522_v12 }
  0xf8   : > { %v661_v9 = vpop.permute.xlu2 %660 }
  0xf9   : > { %754 = vst.msk [vmem:[#allocation3 + $0x18] sm:$0xff] %vm750_vm4, %v661_v9 }
  0xfa   : > { %865 = vrot.lane.b32.xlu1 %v2844_v32, %s2490_s22 }
  0xfc   : > { %869 = vrot.lane.b32.xlu0 %v2863_v44, %s2490_s22  ;;  %v524_v19 = vpop.permute.xlu1 %523 }
  0xfd   : > { %589 = vst.msk [vmem:[#allocation3 + $0xf8] sm:$0xff] %vm557_vm3, %v524_v19 }
  0xfe   : > { %v657_v62 = vpop.permute.xlu0 %656  ;;  %861 = vrot.lane.b32.xlu2 %v2817_v17, %s2490_s22 }
  0xff   : > { %752 = vst.msk [vmem:[#allocation3 + $0x8] sm:$0xff] %vm750_vm4, %v657_v62  ;;  %v299_v62 = vld [vmem:[%s2579_s20 + $0xf8] sm:$0xff]  ;;  %s3612_s20 = scalar_lea.vmem %s3755_s3, %s2412_s17 }
 0x100   : > { %v667_v10 = vpop.permute.xlu2 %666  ;;  %332 = vst.msk [vmem:[#allocation2 + $0x189] sm:$0xff] %vm222_vm0, %v299_v62  ;;  %v3819_v62 = vld [vmem:[#allocation7_spill] sm:$0xff] }
 0x101   : > { %757 = vst.msk [vmem:[#allocation3 + $0x30] sm:$0xff] %vm750_vm4, %v667_v10 }
 0x102   : > { %871 = vrot.lane.b32.xlu1 %v2875_v61, %s2490_s22 }
 0x104   : > { %875 = vrot.lane.b32.xlu0 %v2890_v21, %s2490_s22  ;;  %v659_v32 = vpop.permute.xlu1 %658 }
 0x105   : > { %753 = vst.msk [vmem:[#allocation3 + $0x10] sm:$0xff] %vm750_vm4, %v659_v32 }
 0x106   : > { %v663_v58 = vpop.permute.xlu0 %662  ;;  %867 = vrot.lane.b32.xlu2 %v2842_v29, %s2490_s22 }
 0x107   : > { %755 = vst.msk [vmem:[#allocation3 + $0x20] sm:$0xff] %vm750_vm4, %v663_v58 }
 0x108   : > { %v673_v2 = vpop.permute.xlu2 %672 }
 0x109   : > { %760 = vst.msk [vmem:[#allocation3 + $0x48] sm:$0xff] %vm750_vm4, %v673_v2  ;;  %v3140_v2 = vld [vmem:[#allocation2 + $0x188] sm:$0xff] }
 0x10a   : > { %877 = vrot.lane.b32.xlu1 %v2902_v63, %s2490_s22 }
 0x10c   : > { %881 = vrot.lane.b32.xlu0 %v2917_v34, %s2490_s22  ;;  %v665_v61 = vpop.permute.xlu1 %664 }
 0x10d   : > { %756 = vst.msk [vmem:[#allocation3 + $0x28] sm:$0xff] %vm750_vm4, %v665_v61 }
 0x10e   : > { %v669_v5 = vpop.permute.xlu0 %668  ;;  %873 = vrot.lane.b32.xlu2 %v2866_v46, %s2490_s22 }
 0x10f   : > { %758 = vst.msk [vmem:[#allocation3 + $0x38] sm:$0xff] %vm750_vm4, %v669_v5 }
 0x110   : > { %v679_v11 = vpop.permute.xlu2 %678 }
 0x111   : > { %763 = vst.msk [vmem:[#allocation3 + $0x60] sm:$0xff] %vm750_vm4, %v679_v11  ;;  %v3220_v11 = vld [vmem:[#allocation2 + $0x181] sm:$0xff] }
 0x112   : > { %883 = vrot.lane.b32.xlu1 %v2929_v50, %s2490_s22 }
 0x114   : > { %887 = vrot.lane.b32.xlu0 %v2944_v3, %s2490_s22  ;;  %v671_v63 = vpop.permute.xlu1 %670 }
 0x115   : > { %759 = vst.msk [vmem:[#allocation3 + $0x40] sm:$0xff] %vm750_vm4, %v671_v63  ;;  %v3816_v63 = vld [vmem:[#allocation4_spill] sm:$0xff] }
 0x116   : > { %v675_v12 = vpop.permute.xlu0 %674  ;;  %879 = vrot.lane.b32.xlu2 %v2893_v35, %s2490_s22 }
 0x117   : > { %761 = vst.msk [vmem:[#allocation3 + $0x50] sm:$0xff] %vm750_vm4, %v675_v12 }
 0x118   : > { %v685_v9 = vpop.permute.xlu2 %684 }
 0x119   : > { %766 = vst.msk [vmem:[#allocation3 + $0x78] sm:$0xff] %vm750_vm4, %v685_v9 }
 0x11a   : > { %889 = vrot.lane.b32.xlu1 %v2956_v54, %s2490_s22 }
 0x11c   : > { %893 = vrot.lane.b32.xlu0 %v2971_v40, %s2490_s22  ;;  %v677_v3 = vpop.permute.xlu1 %676 }
 0x11d   : > { %762 = vst.msk [vmem:[#allocation3 + $0x58] sm:$0xff] %vm750_vm4, %v677_v3 }
 0x11e   : > { %v681_v50 = vpop.permute.xlu0 %680  ;;  %885 = vrot.lane.b32.xlu2 %v2920_v38, %s2490_s22 }
 0x11f   : > { %764 = vst.msk [vmem:[#allocation3 + $0x68] sm:$0xff] %vm750_vm4, %v681_v50  ;;  %v3818_v50 = vld [vmem:[#allocation5_spill] sm:$0xff] }
 0x120   : > { %v691_v19 = vpop.permute.xlu2 %690 }
 0x121   : > { %769 = vst.msk [vmem:[#allocation3 + $0x90] sm:$0xff] %vm750_vm4, %v691_v19 }
 0x122   : > { %895 = vrot.lane.b32.xlu1 %v2983_v8, %s2490_s22 }
 0x124   : > { %899 = vrot.lane.b32.xlu0 %v2998_v26, %s2490_s22  ;;  %v683_v40 = vpop.permute.xlu1 %682 }
 0x125   : > { %765 = vst.msk [vmem:[#allocation3 + $0x70] sm:$0xff] %vm750_vm4, %v683_v40  ;;  %v3820_v40 = vld [vmem:[#allocation13_spill] sm:$0xff] }
 0x126   : > { %v687_v54 = vpop.permute.xlu0 %686  ;;  %891 = vrot.lane.b32.xlu2 %v2947_v22, %s2490_s22  ;;  %v813_v22 = vld [vmem:[#allocation2 + $0x180] sm:$0xff] }
 0x127   : > { %767 = vst.msk [vmem:[#allocation3 + $0x80] sm:$0xff] %vm750_vm4, %v687_v54 }
 0x128   : > { %v697_v38 = vpop.permute.xlu2 %696 }
 0x129   : > { %772 = vst.msk [vmem:[#allocation3 + $0xa8] sm:$0xff] %vm750_vm4, %v697_v38 }
 0x12a   : > { %901 = vrot.lane.b32.xlu1 %v3010_v41, %s2490_s22 }
 0x12c   : > { %905 = vrot.lane.b32.xlu0 %v3025_v14, %s2490_s22  ;;  %v689_v8 = vpop.permute.xlu1 %688 }
 0x12d   : > { %768 = vst.msk [vmem:[#allocation3 + $0x88] sm:$0xff] %vm750_vm4, %v689_v8  ;;  %v3821_v8 = vld [vmem:[#allocation6_spill] sm:$0xff] }
 0x12e   : > { %v693_v10 = vpop.permute.xlu0 %692  ;;  %897 = vrot.lane.b32.xlu2 %v2974_v13, %s2490_s22 }
 0x12f   : > { %770 = vst.msk [vmem:[#allocation3 + $0x98] sm:$0xff] %vm750_vm4, %v693_v10 }
 0x130   : > { %v703_v32 = vpop.permute.xlu2 %702 }
 0x131   : > { %775 = vst.msk [vmem:[#allocation3 + $0xc0] sm:$0xff] %vm750_vm4, %v703_v32  ;;  %v3823_v32 = vld [vmem:[#allocation16_spill] sm:$0xff] }
 0x132   : > { %907 = vrot.lane.b32.xlu1 %v813_v22, %s2490_s22  ;;  %v3822_v22 = vld [vmem:[#allocation9_spill] sm:$0xff] }
 0x134   : > { %1040 = vrot.lane.b32.xlu0 %v2596_v7, %s2491_s23  ;;  %v695_v14 = vpop.permute.xlu1 %694 }
 0x135   : > { %771 = vst.msk [vmem:[#allocation3 + $0xa0] sm:$0xff] %vm750_vm4, %v695_v14 }
 0x136   : > { %v699_v58 = vpop.permute.xlu0 %698  ;;  %903 = vrot.lane.b32.xlu2 %v3001_v6, %s2490_s22 }
 0x137   : > { %773 = vst.msk [vmem:[#allocation3 + $0xb0] sm:$0xff] %vm750_vm4, %v699_v58 }
 0x138   : > { %v709_v13 = vpop.permute.xlu2 %708 }
 0x139   : > { %778 = vst.msk [vmem:[#allocation3 + $0xd8] sm:$0xff] %vm750_vm4, %v709_v13  ;;  %v3824_v13 = vld [vmem:[#allocation8_spill] sm:$0xff] }
 0x13a   : > { %1042 = vrot.lane.b32.xlu1 %v2613_v15, %s2491_s23 }
 0x13c   : > { %1046 = vrot.lane.b32.xlu0 %v2647_v27, %s2491_s23  ;;  %v701_v7 = vpop.permute.xlu1 %700 }
 0x13d   : > { %774 = vst.msk [vmem:[#allocation3 + $0xb8] sm:$0xff] %vm750_vm4, %v701_v7 }
 0x13e   : > { %v705_v4 = vpop.permute.xlu0 %704  ;;  %909 = vrot.lane.b32.xlu2 %v3140_v2, %s2490_s22 }
 0x13f   : > { %776 = vst.msk [vmem:[#allocation3 + $0xc8] sm:$0xff] %vm750_vm4, %v705_v4  ;;  %v3825_v4 = vld [vmem:[#allocation12_spill] sm:$0xff] }
 0x140   : > { %v715_v61 = vpop.permute.xlu2 %714 }
 0x141   : > { %781 = vst.msk [vmem:[#allocation3 + $0xf0] sm:$0xff] %vm750_vm4, %v715_v61  ;;  %v3826_v61 = vld [vmem:[#allocation19_spill] sm:$0xff] }
 0x142   : > { %1048 = vrot.lane.b32.xlu1 %v2619_v18, %s2491_s23 }
 0x144   : > { %1052 = vrot.lane.b32.xlu0 %v2665_v33, %s2491_s23  ;;  %v707_v15 = vpop.permute.xlu1 %706 }
 0x145   : > { %777 = vst.msk [vmem:[#allocation3 + $0xd0] sm:$0xff] %vm750_vm4, %v707_v15 }
 0x146   : > { %v711_v27 = vpop.permute.xlu0 %710  ;;  %1044 = vrot.lane.b32.xlu2 %v2633_v23, %s2491_s23 }
 0x147   : > { %779 = vst.msk [vmem:[#allocation3 + $0xe0] sm:$0xff] %vm750_vm4, %v711_v27 }
 0x148   : > { %v850_v5 = vpop.permute.xlu2 %849 }
 0x149   : > { %945 = vst.msk [vmem:[#allocation3 + $0x8] sm:$0xff] %vm943_vm5, %v850_v5  ;;  %v3827_v5 = vld [vmem:[#allocation11_spill] sm:$0xff] }
 0x14a   : > { %1054 = vrot.lane.b32.xlu1 %v2642_v25, %s2491_s23 }
 0x14c   : > { %1058 = vrot.lane.b32.xlu0 %v2683_v39, %s2491_s23  ;;  %v713_v18 = vpop.permute.xlu1 %712 }
 0x14d   : > { %780 = vst.msk [vmem:[#allocation3 + $0xe8] sm:$0xff] %vm750_vm4, %v713_v18 }
 0x14e   : > { %v717_v33 = vpop.permute.xlu0 %716  ;;  %1050 = vrot.lane.b32.xlu2 %v2639_v24, %s2491_s23 }
 0x14f   : > { %782 = vst.msk [vmem:[#allocation3 + $0xf8] sm:$0xff] %vm750_vm4, %v717_v33  ;;  %v3828_v33 = vld [vmem:[#allocation15_spill] sm:$0xff] }
 0x150   : > { %v856_v23 = vpop.permute.xlu2 %855 }
 0x151   : > { %948 = vst.msk [vmem:[#allocation3 + $0x20] sm:$0xff] %vm943_vm5, %v856_v23  ;;  %v3829_v23 = vld [vmem:[#allocation22_spill] sm:$0xff] }
 0x152   : > { %1060 = vrot.lane.b32.xlu1 %v2660_v31, %s2491_s23 }
 0x154   : > { %1064 = vrot.lane.b32.xlu0 %v2701_v45, %s2491_s23  ;;  %v848_v25 = vpop.permute.xlu1 %847 }
 0x155   : > { %944 = vst.msk [vmem:[#allocation3] sm:$0xff] %vm943_vm5, %v848_v25 }
 0x156   : > { %v852_v39 = vpop.permute.xlu0 %851  ;;  %1056 = vrot.lane.b32.xlu2 %v2658_v30, %s2491_s23 }
 0x157   : > { %946 = vst.msk [vmem:[#allocation3 + $0x10] sm:$0xff] %vm943_vm5, %v852_v39 }
 0x158   : > { %v862_v24 = vpop.permute.xlu2 %861 }
 0x159   : > { %951 = vst.msk [vmem:[#allocation3 + $0x38] sm:$0xff] %vm943_vm5, %v862_v24  ;;  %v3830_v24 = vld [vmem:[#allocation14_spill] sm:$0xff] }
 0x15a   : > { %1066 = vrot.lane.b32.xlu1 %v2678_v37, %s2491_s23 }
 0x15c   : > { %1070 = vrot.lane.b32.xlu0 %v2716_v49, %s2491_s23  ;;  %v854_v31 = vpop.permute.xlu1 %853 }
 0x15d   : > { %947 = vst.msk [vmem:[#allocation3 + $0x18] sm:$0xff] %vm943_vm5, %v854_v31 }
 0x15e   : > { %v858_v45 = vpop.permute.xlu0 %857  ;;  %1062 = vrot.lane.b32.xlu2 %v2676_v36, %s2491_s23 }
 0x15f   : > { %949 = vst.msk [vmem:[#allocation3 + $0x28] sm:$0xff] %vm943_vm5, %v858_v45  ;;  %v3831_v45 = vld [vmem:[#allocation18_spill] sm:$0xff] }
 0x160   : > { %v868_v30 = vpop.permute.xlu2 %867 }
 0x161   : > { %954 = vst.msk [vmem:[#allocation3 + $0x50] sm:$0xff] %vm943_vm5, %v868_v30  ;;  %v3832_v30 = vld [vmem:[#allocation25_spill] sm:$0xff] }
 0x162   : > { %1072 = vrot.lane.b32.xlu1 %v2696_v43, %s2491_s23 }
 0x164   : > { %1076 = vrot.lane.b32.xlu0 %v2730_v53, %s2491_s23  ;;  %v860_v37 = vpop.permute.xlu1 %859 }
 0x165   : > { %950 = vst.msk [vmem:[#allocation3 + $0x30] sm:$0xff] %vm943_vm5, %v860_v37 }
 0x166   : > { %v864_v49 = vpop.permute.xlu0 %863  ;;  %1068 = vrot.lane.b32.xlu2 %v2694_v42, %s2491_s23 }
 0x167   : > { %952 = vst.msk [vmem:[#allocation3 + $0x40] sm:$0xff] %vm943_vm5, %v864_v49 }
 0x168   : > { %v874_v36 = vpop.permute.xlu2 %873 }
 0x169   : > { %957 = vst.msk [vmem:[#allocation3 + $0x68] sm:$0xff] %vm943_vm5, %v874_v36  ;;  %v3833_v36 = vld [vmem:[#allocation17_spill] sm:$0xff] }
 0x16a   : > { %1078 = vrot.lane.b32.xlu1 %v2712_v48, %s2491_s23 }
 0x16c   : > { %1082 = vrot.lane.b32.xlu0 %v2744_v57, %s2491_s23  ;;  %v866_v43 = vpop.permute.xlu1 %865 }
 0x16d   : > { %953 = vst.msk [vmem:[#allocation3 + $0x48] sm:$0xff] %vm943_vm5, %v866_v43 }
 0x16e   : > { %v870_v53 = vpop.permute.xlu0 %869  ;;  %1074 = vrot.lane.b32.xlu2 %v2710_v47, %s2491_s23 }
 0x16f   : > { %955 = vst.msk [vmem:[#allocation3 + $0x58] sm:$0xff] %vm943_vm5, %v870_v53  ;;  %v3834_v53 = vld [vmem:[#allocation21_spill] sm:$0xff] }
 0x170   : > { %v880_v42 = vpop.permute.xlu2 %879 }
 0x171   : > { %960 = vst.msk [vmem:[#allocation3 + $0x80] sm:$0xff] %vm943_vm5, %v880_v42  ;;  %v3835_v42 = vld [vmem:[#allocation28_spill] sm:$0xff] }
 0x172   : > { %1084 = vrot.lane.b32.xlu1 %v2726_v52, %s2491_s23 }
 0x174   : > { %1088 = vrot.lane.b32.xlu0 %v2756_v60, %s2491_s23  ;;  %v872_v48 = vpop.permute.xlu1 %871 }
 0x175   : > { %956 = vst.msk [vmem:[#allocation3 + $0x60] sm:$0xff] %vm943_vm5, %v872_v48 }
 0x176   : > { %v876_v57 = vpop.permute.xlu0 %875  ;;  %1080 = vrot.lane.b32.xlu2 %v2724_v51, %s2491_s23 }
 0x177   : > { %958 = vst.msk [vmem:[#allocation3 + $0x70] sm:$0xff] %vm943_vm5, %v876_v57 }
 0x178   : > { %v886_v47 = vpop.permute.xlu2 %885 }
 0x179   : > { %963 = vst.msk [vmem:[#allocation3 + $0x98] sm:$0xff] %vm943_vm5, %v886_v47  ;;  %v3836_v47 = vld [vmem:[#allocation20_spill] sm:$0xff] }
 0x17a   : > { %1090 = vrot.lane.b32.xlu1 %v2740_v56, %s2491_s23 }
 0x17c   : > { %1094 = vrot.lane.b32.xlu0 %v2768_v1, %s2491_s23  ;;  %v878_v52 = vpop.permute.xlu1 %877 }
 0x17d   : > { %959 = vst.msk [vmem:[#allocation3 + $0x78] sm:$0xff] %vm943_vm5, %v878_v52 }
 0x17e   : > { %v882_v60 = vpop.permute.xlu0 %881  ;;  %1086 = vrot.lane.b32.xlu2 %v2738_v55, %s2491_s23  ;;  %v3231_v55 = vld [vmem:[#allocation2 + $0x189] sm:$0xff] }
 0x17f   : > { %961 = vst.msk [vmem:[#allocation3 + $0x88] sm:$0xff] %vm943_vm5, %v882_v60  ;;  %v3837_v60 = vld [vmem:[#allocation24_spill] sm:$0xff] }
 0x180   : > { %v892_v51 = vpop.permute.xlu2 %891 }
 0x181   : > { %966 = vst.msk [vmem:[#allocation3 + $0xb0] sm:$0xff] %vm943_vm5, %v892_v51  ;;  %v3838_v51 = vld [vmem:[#allocation31_spill] sm:$0xff] }
 0x182   : > { %1096 = vrot.lane.b32.xlu1 %v2752_v59, %s2491_s23  ;;  %v3817_v59 = vld [vmem:[#allocation10_spill] sm:$0xff] }
 0x184   : > { %1100 = vrot.lane.b32.xlu0 %v3220_v11, %s2491_s23  ;;  %v884_v56 = vpop.permute.xlu1 %883 }
 0x185   : > { %962 = vst.msk [vmem:[#allocation3 + $0x90] sm:$0xff] %vm943_vm5, %v884_v56 }
 0x186   : > { %v888_v1 = vpop.permute.xlu0 %887  ;;  %1092 = vrot.lane.b32.xlu2 %v3816_v63, %s2491_s23  ;;  %v3839_v63 = vld [vmem:[#allocation23_spill] sm:$0xff] }
 0x187   : > { %964 = vst.msk [vmem:[#allocation3 + $0xa0] sm:$0xff] %vm943_vm5, %v888_v1 }
 0x188   : > { %v898_v12 = vpop.permute.xlu2 %897 }
 0x189   : > { %969 = vst.msk [vmem:[#allocation3 + $0xc8] sm:$0xff] %vm943_vm5, %v898_v12 }
 0x18a   : > { %1102 = vrot.lane.b32.xlu1 %v3231_v55, %s2491_s23 }
 0x18c   : > { %1235 = vrot.lane.b32.xlu0 %v3817_v59, %s2492_s24  ;;  %v890_v9 = vpop.permute.xlu1 %889  ;;  %v3840_v59 = vld [vmem:[#allocation27_spill] sm:$0xff] }
 0x18d   : > { %965 = vst.msk [vmem:[#allocation3 + $0xa8] sm:$0xff] %vm943_vm5, %v890_v9 }
 0x18e   : > { %v894_v3 = vpop.permute.xlu0 %893  ;;  %1098 = vrot.lane.b32.xlu2 %v3818_v50, %s2491_s23  ;;  %v3841_v50 = vld [vmem:[#allocation26_spill] sm:$0xff] }
 0x18f   : > { %967 = vst.msk [vmem:[#allocation3 + $0xb8] sm:$0xff] %vm943_vm5, %v894_v3 }
 0x190   : > { %v904_v19 = vpop.permute.xlu2 %903 }
 0x191   : > { %972 = vst.msk [vmem:[#allocation3 + $0xe0] sm:$0xff] %vm943_vm5, %v904_v19 }
 0x192   : > { %1237 = vrot.lane.b32.xlu1 %v3819_v62, %s2492_s24  ;;  %v3842_v62 = vld [vmem:[#allocation30_spill] sm:$0xff] }
 0x194   : > { %1241 = vrot.lane.b32.xlu0 %v3820_v40, %s2492_s24  ;;  %v896_v54 = vpop.permute.xlu1 %895 }
 0x195   : > { %968 = vst.msk [vmem:[#allocation3 + $0xc0] sm:$0xff] %vm943_vm5, %v896_v54  ;;  %v3843_v54 = vld [vmem:[#allocation29_spill] sm:$0xff] }
 0x196   : > { %v900_v38 = vpop.permute.xlu0 %899  ;;  %1233 = vrot.lane.b32.xlu2 %v3821_v8, %s2492_s24  ;;  %v3323_v8 = vld [vmem:[#allocation2 + $0x18a] sm:$0xff] }
 0x197   : > { %970 = vst.msk [vmem:[#allocation3 + $0xd0] sm:$0xff] %vm943_vm5, %v900_v38 }
 0x198   : > { %v910_v10 = vpop.permute.xlu2 %909 }
 0x199   : > { %975 = vst.msk [vmem:[#allocation3 + $0xf8] sm:$0xff] %vm943_vm5, %v910_v10  ;;  %v3844_v10 = vld [vmem:[#allocation33_spill] sm:$0xff] }
 0x19a   : > { %1243 = vrot.lane.b32.xlu1 %v3822_v22, %s2492_s24 }
 0x19c   : > { %1247 = vrot.lane.b32.xlu0 %v3823_v32, %s2492_s24  ;;  %v902_v14 = vpop.permute.xlu1 %901  ;;  %v3845_v32 = vld [vmem:[#allocation32_spill] sm:$0xff] }
 0x19d   : > { %971 = vst.msk [vmem:[#allocation3 + $0xd8] sm:$0xff] %vm943_vm5, %v902_v14  ;;  %v1363_v14 = vld [vmem:[#allocation2 + $0x30] sm:$0xff] }
 0x19e   : > { %v906_v58 = vpop.permute.xlu0 %905  ;;  %1239 = vrot.lane.b32.xlu2 %v3824_v13, %s2492_s24  ;;  %v1365_v13 = vld [vmem:[#allocation2 + $0x48] sm:$0xff] }
 0x19f   : > { %973 = vst.msk [vmem:[#allocation3 + $0xe8] sm:$0xff] %vm943_vm5, %v906_v58 }
 0x1a0   : > { %v1045_v7 = vpop.permute.xlu2 %1044 }
 0x1a1   : > { %1139 = vst.msk [vmem:[#allocation3 + $0x10] sm:$0xff] %vm1136_vm6, %v1045_v7  ;;  %v3336_v7 = vld [vmem:[#allocation2 + $0x182] sm:$0xff] }
 0x1a2   : > { %1249 = vrot.lane.b32.xlu1 %v3825_v4, %s2492_s24 }
 0x1a4   : > { %1253 = vrot.lane.b32.xlu0 %v3826_v61, %s2492_s24  ;;  %v908_v15 = vpop.permute.xlu1 %907 }
 0x1a5   : > { %974 = vst.msk [vmem:[#allocation3 + $0xf0] sm:$0xff] %vm943_vm5, %v908_v15 }
 0x1a6   : > { %v1041_v27 = vpop.permute.xlu0 %1040  ;;  %1245 = vrot.lane.b32.xlu2 %v3827_v5, %s2492_s24 }
 0x1a7   : > { %1137 = vst.msk [vmem:[#allocation3] sm:$0xff] %vm1136_vm6, %v1041_v27  ;;  %v1364_v27 = vld [vmem:[#allocation2 + $0x38] sm:$0xff] }
 0x1a8   : > { %v1051_v18 = vpop.permute.xlu2 %1050 }
 0x1a9   : > { %1142 = vst.msk [vmem:[#allocation3 + $0x28] sm:$0xff] %vm1136_vm6, %v1051_v18 }
 0x1aa   : > { %1255 = vrot.lane.b32.xlu1 %v3828_v33, %s2492_s24 }
 0x1ac   : > { %1259 = vrot.lane.b32.xlu0 %v3829_v23, %s2492_s24  ;;  %v1043_v25 = vpop.permute.xlu1 %1042 }
 0x1ad   : > { %1138 = vst.msk [vmem:[#allocation3 + $0x8] sm:$0xff] %vm1136_vm6, %v1043_v25 }
 0x1ae   : > { %v1047_v39 = vpop.permute.xlu0 %1046  ;;  %1251 = vrot.lane.b32.xlu2 %v3830_v24, %s2492_s24 }
 0x1af   : > { %1140 = vst.msk [vmem:[#allocation3 + $0x18] sm:$0xff] %vm1136_vm6, %v1047_v39  ;;  %v1370_v39 = vld [vmem:[#allocation2 + $0x80] sm:$0xff] }
 0x1b0   : > { %v1057_v31 = vpop.permute.xlu2 %1056 }
 0x1b1   : > { %1145 = vst.msk [vmem:[#allocation3 + $0x40] sm:$0xff] %vm1136_vm6, %v1057_v31  ;;  %v1373_v31 = vld [vmem:[#allocation2 + $0xa8] sm:$0xff] }
 0x1b2   : > { %1261 = vrot.lane.b32.xlu1 %v3831_v45, %s2492_s24 }
 0x1b4   : > { %1265 = vrot.lane.b32.xlu0 %v3832_v30, %s2492_s24  ;;  %v1049_v37 = vpop.permute.xlu1 %1048  ;;  %v1376_v30 = vld [vmem:[#allocation2 + $0xc8] sm:$0xff] }
 0x1b5   : > { %1141 = vst.msk [vmem:[#allocation3 + $0x20] sm:$0xff] %vm1136_vm6, %v1049_v37  ;;  %v1572_v37 = vld [vmem:[#allocation2 + $0xf1] sm:$0xff] }
 0x1b6   : > { %v1053_v49 = vpop.permute.xlu0 %1052  ;;  %1257 = vrot.lane.b32.xlu2 %v3833_v36, %s2492_s24  ;;  %v1765_v36 = vld [vmem:[#allocation2 + $0xf2] sm:$0xff] }
 0x1b7   : > { %1143 = vst.msk [vmem:[#allocation3 + $0x30] sm:$0xff] %vm1136_vm6, %v1053_v49 }
 0x1b8   : > { %v1063_v43 = vpop.permute.xlu2 %1062 }
 0x1b9   : > { %1148 = vst.msk [vmem:[#allocation3 + $0x58] sm:$0xff] %vm1136_vm6, %v1063_v43 }
 0x1ba   : > { %1267 = vrot.lane.b32.xlu1 %v3834_v53, %s2492_s24  ;;  %v1773_v53 = vld [vmem:[#allocation2 + $0x152] sm:$0xff] }
 0x1bc   : > { %1271 = vrot.lane.b32.xlu0 %v3835_v42, %s2492_s24  ;;  %v1055_v48 = vpop.permute.xlu1 %1054 }
 0x1bd   : > { %1144 = vst.msk [vmem:[#allocation3 + $0x38] sm:$0xff] %vm1136_vm6, %v1055_v48  ;;  %v1564_v48 = vld [vmem:[#allocation2 + $0x91] sm:$0xff] }
 0x1be   : > { %v1059_v57 = vpop.permute.xlu0 %1058  ;;  %1263 = vrot.lane.b32.xlu2 %v3836_v47, %s2492_s24 }
 0x1bf   : > { %1146 = vst.msk [vmem:[#allocation3 + $0x48] sm:$0xff] %vm1136_vm6, %v1059_v57  ;;  %v1580_v57 = vld [vmem:[#allocation2 + $0x151] sm:$0xff] }
 0x1c0   : > { %v1069_v52 = vpop.permute.xlu2 %1068 }
 0x1c1   : > { %1151 = vst.msk [vmem:[#allocation3 + $0x70] sm:$0xff] %vm1136_vm6, %v1069_v52 }
 0x1c2   : > { %1273 = vrot.lane.b32.xlu1 %v3837_v60, %s2492_s24  ;;  %v1380_v60 = vld [vmem:[#allocation2 + $0xf8] sm:$0xff] }
 0x1c4   : > { %1277 = vrot.lane.b32.xlu0 %v3838_v51, %s2492_s24  ;;  %v1061_v56 = vpop.permute.xlu1 %1060 }
 0x1c5   : > { %1147 = vst.msk [vmem:[#allocation3 + $0x50] sm:$0xff] %vm1136_vm6, %v1061_v56  ;;  %v1749_v56 = vld [vmem:[#allocation2 + $0x32] sm:$0xff] }
 0x1c6   : > { %v1065_v1 = vpop.permute.xlu0 %1064  ;;  %1269 = vrot.lane.b32.xlu2 %v3839_v63, %s2492_s24 }
 0x1c7   : > { %1149 = vst.msk [vmem:[#allocation3 + $0x60] sm:$0xff] %vm1136_vm6, %v1065_v1  ;;  %v1556_v1 = vld [vmem:[#allocation2 + $0x31] sm:$0xff] }
 0x1c8   : > { %v1075_v12 = vpop.permute.xlu2 %1074 }
 0x1c9   : > { %1154 = vst.msk [vmem:[#allocation3 + $0x88] sm:$0xff] %vm1136_vm6, %v1075_v12 }
 0x1ca   : > { %1279 = vrot.lane.b32.xlu1 %v3840_v59, %s2492_s24  ;;  %v1757_v59 = vld [vmem:[#allocation2 + $0x92] sm:$0xff] }
 0x1cc   : > { %1283 = vrot.lane.b32.xlu0 %v3021_v0, %s2492_s24  ;;  %v1067_v9 = vpop.permute.xlu1 %1066 }
 0x1cd   : > { %1150 = vst.msk [vmem:[#allocation3 + $0x68] sm:$0xff] %vm1136_vm6, %v1067_v9 }
 0x1ce   : > { %v1071_v3 = vpop.permute.xlu0 %1070  ;;  %1275 = vrot.lane.b32.xlu2 %v3841_v50, %s2492_s24 }
 0x1cf   : > { %1152 = vst.msk [vmem:[#allocation3 + $0x78] sm:$0xff] %vm1136_vm6, %v1071_v3  ;;  %v1581_v3 = vld [vmem:[#allocation2 + $0x159] sm:$0xff] }
 0x1d0   : > { %v1081_v19 = vpop.permute.xlu2 %1080 }
 0x1d1   : > { %1157 = vst.msk [vmem:[#allocation3 + $0xa0] sm:$0xff] %vm1136_vm6, %v1081_v19 }
 0x1d2   : > { %1285 = vrot.lane.b32.xlu1 %v3842_v62, %s2492_s24  ;;  %v1766_v62 = vld [vmem:[#allocation2 + $0xfa] sm:$0xff] }
 0x1d4   : > { %1289 = vrot.lane.b32.xlu0 %v3036_v20, %s2492_s24  ;;  %v1073_v40 = vpop.permute.xlu1 %1072 }
 0x1d5   : > { %1153 = vst.msk [vmem:[#allocation3 + $0x80] sm:$0xff] %vm1136_vm6, %v1073_v40 }
 0x1d6   : > { %v1077_v0 = vpop.permute.xlu0 %1076  ;;  %1281 = vrot.lane.b32.xlu2 %v3843_v54, %s2492_s24  ;;  %v1573_v54 = vld [vmem:[#allocation2 + $0xf9] sm:$0xff] }
 0x1d7   : > { %1155 = vst.msk [vmem:[#allocation3 + $0x90] sm:$0xff] %vm1136_vm6, %v1077_v0  ;;  %v1557_v0 = vld [vmem:[#allocation2 + $0x39] sm:$0xff] }
 0x1d8   : > { %v1087_v38 = vpop.permute.xlu2 %1086 }
 0x1d9   : > { %1160 = vst.msk [vmem:[#allocation3 + $0xb8] sm:$0xff] %vm1136_vm6, %v1087_v38 }
 0x1da   : > { %1291 = vrot.lane.b32.xlu1 %v3844_v10, %s2492_s24 }
 0x1dc   : > { %1295 = vrot.lane.b32.xlu0 %v3323_v8, %s2492_s24  ;;  %v1079_v20 = vpop.permute.xlu1 %1078 }
 0x1dd   : > { %1156 = vst.msk [vmem:[#allocation3 + $0x98] sm:$0xff] %vm1136_vm6, %v1079_v20 }
 0x1de   : > { %v1083_v22 = vpop.permute.xlu0 %1082  ;;  %1287 = vrot.lane.b32.xlu2 %v3845_v32, %s2492_s24 }
 0x1df   : > { %1158 = vst.msk [vmem:[#allocation3 + $0xa8] sm:$0xff] %vm1136_vm6, %v1083_v22  ;;  %v1774_v22 = vld [vmem:[#allocation2 + $0x15a] sm:$0xff] }
 0x1e0   : > { %v1093_v58 = vpop.permute.xlu2 %1092 }
 0x1e1   : > { %1163 = vst.msk [vmem:[#allocation3 + $0xd0] sm:$0xff] %vm1136_vm6, %v1093_v58  ;;  %v1750_v58 = vld [vmem:[#allocation2 + $0x3a] sm:$0xff] }
 0x1e2   : > { %1427 = vrot.lane.b32.xlu1 %v1363_v14, %s2493_s25 }
 0x1e4   : > { %1431 = vrot.lane.b32.xlu0 %v1365_v13, %s2493_s25  ;;  %v1085_v4 = vpop.permute.xlu1 %1084 }
 0x1e5   : > { %1159 = vst.msk [vmem:[#allocation3 + $0xb0] sm:$0xff] %vm1136_vm6, %v1085_v4  ;;  %v1574_v4 = vld [vmem:[#allocation2 + $0x109] sm:$0xff] }
 0x1e6   : > { %v1089_v61 = vpop.permute.xlu0 %1088  ;;  %1293 = vrot.lane.b32.xlu2 %v3336_v7, %s2492_s24 }
 0x1e7   : > { %1161 = vst.msk [vmem:[#allocation3 + $0xc0] sm:$0xff] %vm1136_vm6, %v1089_v61  ;;  %v1381_v61 = vld [vmem:[#allocation2 + $0x108] sm:$0xff] }
 0x1e8   : > { %v1099_v15 = vpop.permute.xlu2 %1098 }
 0x1e9   : > { %1166 = vst.msk [vmem:[#allocation3 + $0xe8] sm:$0xff] %vm1136_vm6, %v1099_v15 }
 0x1ea   : > { %1433 = vrot.lane.b32.xlu1 %v2813_v16, %s2493_s25  ;;  %v1367_v16 = vld [vmem:[#allocation2 + $0x60] sm:$0xff] }
 0x1ec   : > { %1437 = vrot.lane.b32.xlu0 %v2817_v17, %s2493_s25  ;;  %v1091_v5 = vpop.permute.xlu1 %1090 }
 0x1ed   : > { %1162 = vst.msk [vmem:[#allocation3 + $0xc8] sm:$0xff] %vm1136_vm6, %v1091_v5 }
 0x1ee   : > { %v1095_v18 = vpop.permute.xlu0 %1094  ;;  %1429 = vrot.lane.b32.xlu2 %v1364_v27, %s2493_s25  ;;  %v1582_v27 = vld [vmem:[#allocation2 + $0x169] sm:$0xff] }
 0x1ef   : > { %1164 = vst.msk [vmem:[#allocation3 + $0xd8] sm:$0xff] %vm1136_vm6, %v1095_v18  ;;  %v1775_v18 = vld [vmem:[#allocation2 + $0x16a] sm:$0xff] }
 0x1f0   : > { %v1234_v33 = vpop.permute.xlu2 %1233 }
 0x1f1   : > { %1330 = vst.msk [vmem:[#allocation3] sm:$0xff] %vm1329_vm7, %v1234_v33  ;;  %v1758_v33 = vld [vmem:[#allocation2 + $0x9a] sm:$0xff] }
 0x1f2   : > { %1439 = vrot.lane.b32.xlu1 %v2838_v28, %s2493_s25 }
 0x1f4   : > { %1443 = vrot.lane.b32.xlu0 %v2842_v29, %s2493_s25  ;;  %v1097_v17 = vpop.permute.xlu1 %1096 }
 0x1f5   : > { %1165 = vst.msk [vmem:[#allocation3 + $0xe0] sm:$0xff] %vm1136_vm6, %v1097_v17 }
 0x1f6   : > { %v1101_v23 = vpop.permute.xlu0 %1100  ;;  %1435 = vrot.lane.b32.xlu2 %v1367_v16, %s2493_s25 }
 0x1f7   : > { %1167 = vst.msk [vmem:[#allocation3 + $0xf0] sm:$0xff] %vm1136_vm6, %v1101_v23  ;;  %v1558_v23 = vld [vmem:[#allocation2 + $0x49] sm:$0xff] }
 0x1f8   : > { %v1240_v25 = vpop.permute.xlu2 %1239 }
 0x1f9   : > { %1333 = vst.msk [vmem:[#allocation3 + $0x18] sm:$0xff] %vm1329_vm7, %v1240_v25 }
 0x1fa   : > { %1445 = vrot.lane.b32.xlu1 %v2863_v44, %s2493_s25 }
 0x1fc   : > { %1449 = vrot.lane.b32.xlu0 %v2866_v46, %s2493_s25  ;;  %v1103_v28 = vpop.permute.xlu1 %1102 }
 0x1fd   : > { %1168 = vst.msk [vmem:[#allocation3 + $0xf8] sm:$0xff] %vm1136_vm6, %v1103_v28  ;;  %v1767_v28 = vld [vmem:[#allocation2 + $0x10a] sm:$0xff] }
 0x1fe   : > { %v1236_v29 = vpop.permute.xlu0 %1235  ;;  %1441 = vrot.lane.b32.xlu2 %v1370_v39, %s2493_s25  ;;  %v1382_v39 = vld [vmem:[#allocation2 + $0x110] sm:$0xff] }
 0x1ff   : > { %1331 = vst.msk [vmem:[#allocation3 + $0x8] sm:$0xff] %vm1329_vm7, %v1236_v29 }
 0x200   : > { %v1246_v24 = vpop.permute.xlu2 %1245 }
 0x201   : > { %1336 = vst.msk [vmem:[#allocation3 + $0x30] sm:$0xff] %vm1329_vm7, %v1246_v24 }
 0x202   : > { %1451 = vrot.lane.b32.xlu1 %v2890_v21, %s2493_s25 }
 0x204   : > { %1455 = vrot.lane.b32.xlu0 %v2893_v35, %s2493_s25  ;;  %v1238_v44 = vpop.permute.xlu1 %1237 }
 0x205   : > { %1332 = vst.msk [vmem:[#allocation3 + $0x10] sm:$0xff] %vm1329_vm7, %v1238_v44 }
 0x206   : > { %v1242_v46 = vpop.permute.xlu0 %1241  ;;  %1447 = vrot.lane.b32.xlu2 %v1373_v31, %s2493_s25  ;;  %v1390_v31 = vld [vmem:[#allocation2 + $0x170] sm:$0xff] }
 0x207   : > { %1334 = vst.msk [vmem:[#allocation3 + $0x20] sm:$0xff] %vm1329_vm7, %v1242_v46  ;;  %v1759_v46 = vld [vmem:[#allocation2 + $0xaa] sm:$0xff] }
 0x208   : > { %v1252_v45 = vpop.permute.xlu2 %1251 }
 0x209   : > { %1339 = vst.msk [vmem:[#allocation3 + $0x48] sm:$0xff] %vm1329_vm7, %v1252_v45  ;;  %v1566_v45 = vld [vmem:[#allocation2 + $0xa9] sm:$0xff] }
 0x20a   : > { %1457 = vrot.lane.b32.xlu1 %v2917_v34, %s2493_s25  ;;  %v1379_v34 = vld [vmem:[#allocation2 + $0xf0] sm:$0xff] }
 0x20c   : > { %1475 = vrot.lane.b32.xlu0 %v2998_v26, %s2493_s25  ;;  %v1244_v21 = vpop.permute.xlu1 %1243 }
 0x20d   : > { %1335 = vst.msk [vmem:[#allocation3 + $0x28] sm:$0xff] %vm1329_vm7, %v1244_v21 }
 0x20e   : > { %v1248_v35 = vpop.permute.xlu0 %1247  ;;  %1453 = vrot.lane.b32.xlu2 %v1376_v30, %s2493_s25 }
 0x20f   : > { %1337 = vst.msk [vmem:[#allocation3 + $0x38] sm:$0xff] %vm1329_vm7, %v1248_v35  ;;  %v1575_v35 = vld [vmem:[#allocation2 + $0x111] sm:$0xff] }
 0x210   : > { %v1258_v49 = vpop.permute.xlu2 %1257 }
 0x211   : > { %1342 = vst.msk [vmem:[#allocation3 + $0x60] sm:$0xff] %vm1329_vm7, %v1258_v49  ;;  %v1768_v49 = vld [vmem:[#allocation2 + $0x112] sm:$0xff] }
 0x212   : > { %1652 = vrot.lane.b32.xlu1 %v1572_v37, %s2494_s26 }
 0x214   : > { %1845 = vrot.lane.b32.xlu0 %v1765_v36, %s2495_s27  ;;  %v1250_v26 = vpop.permute.xlu1 %1249  ;;  %v1751_v36 = vld [vmem:[#allocation2 + $0x4a] sm:$0xff] }
 0x215   : > { %1338 = vst.msk [vmem:[#allocation3 + $0x40] sm:$0xff] %vm1329_vm7, %v1250_v26  ;;  %v1978_v26 = vld [vmem:[%s3753_s1 + $0x20] sm:$0xf] }
 0x216   : > { %v1254_v43 = vpop.permute.xlu0 %1253  ;;  %1459 = vrot.lane.b32.xlu2 %v1379_v34, %s2493_s25  ;;  %2415 = vmatpush.msk.msra.mxu2 %vm2080_vm9, %v1978_v26 }
 0x217   : > { %1340 = vst.msk [vmem:[#allocation3 + $0x50] sm:$0xff] %vm1329_vm7, %v1254_v43  ;;  %2416 = vmatpush.msk.msra.mxu3 %vm2080_vm9, %v1978_v26  ;;  %2377 = vmatpush.msk.msra.mxu0 %vm2080_vm9, %v1978_v26 }
 0x218   : > { %v1264_v42 = vpop.permute.xlu2 %1263  ;;  %2414 = vmatpush.msk.msra.mxu1 %vm2080_vm9, %v1978_v26  ;;  %v1754_v26 = vld [vmem:[#allocation2 + $0x6a] sm:$0xff] }
 0x219   : > { %1345 = vst.msk [vmem:[#allocation3 + $0x78] sm:$0xff] %vm1329_vm7, %v1264_v42  ;;  %v1977_v42 = vld [vmem:[%s3753_s1 + $0x18] sm:$0xff] }
 0x21a   : > { %1861 = vrot.lane.b32.xlu1 %v1773_v53, %s2495_s27  ;;  %v1776_v53 = vld [vmem:[#allocation2 + $0x172] sm:$0xff]  ;;  %2418 = vmatpush.msra.mxu2 %v1977_v42 }
 0x21b   : > { %2419 = vmatpush.msra.mxu3 %v1977_v42  ;;  %2096 = vmatpush.msra.mxu0 %v1977_v42 }
 0x21c   : > { %1636 = vrot.lane.b32.xlu0 %v1564_v48, %s2494_s26  ;;  %v1256_v47 = vpop.permute.xlu1 %1255  ;;  %v1976_v48 = vld [vmem:[%s3753_s1 + $0x10] sm:$0xff]  ;;  %2417 = vmatpush.msra.mxu1 %v1977_v42 }
 0x21d   : > { %1341 = vst.msk [vmem:[#allocation3 + $0x58] sm:$0xff] %vm1329_vm7, %v1256_v47  ;;  %v1567_v47 = vld [vmem:[#allocation2 + $0xb1] sm:$0xff]  ;;  %2421 = vmatpush.msra.mxu2 %v1976_v48  ;;  %2422 = vmatpush.msra.mxu3 %v1976_v48 }
 0x21e   : > { %v1260_v52 = vpop.permute.xlu0 %1259  ;;  %1668 = vrot.lane.b32.xlu2 %v1580_v57, %s2494_s26  ;;  %2097 = vmatpush.msra.mxu0 %v1976_v48 }
 0x21f   : > { %1343 = vst.msk [vmem:[#allocation3 + $0x68] sm:$0xff] %vm1329_vm7, %v1260_v52  ;;  %v1975_v52 = vld [vmem:[%s3753_s1 + $0x8] sm:$0xff]  ;;  %2420 = vmatpush.msra.mxu1 %v1976_v48  ;;  %v1779_v48 = vld [vmem:[#allocation2 + $0x19a] sm:$0xff] }
 0x220   : > { %v1270_v51 = vpop.permute.xlu2 %1269  ;;  %2424 = vmatpush.msra.mxu2 %v1975_v52  ;;  %2425 = vmatpush.msra.mxu3 %v1975_v52 }
 0x221   : > { %1348 = vst.msk [vmem:[#allocation3 + $0x90] sm:$0xff] %vm1329_vm7, %v1270_v51  ;;  %2098 = vmatpush.msra.mxu0 %v1975_v52  ;;  %2423 = vmatpush.msra.mxu1 %v1975_v52  ;;  %v1586_v52 = vld [vmem:[#allocation2 + $0x199] sm:$0xff] }
 0x222   : > { %1461 = vrot.lane.b32.xlu1 %v1380_v60, %s2493_s25  ;;  %v1583_v60 = vld [vmem:[#allocation2 + $0x171] sm:$0xff] }
 0x224   : > { %1813 = vrot.lane.b32.xlu0 %v1749_v56, %s2495_s27  ;;  %v1262_v63 = vpop.permute.xlu1 %1261  ;;  %v1974_v56 = vld [vmem:[%s3753_s1] sm:$0xff] }
 0x225   : > { %1344 = vst.msk [vmem:[#allocation3 + $0x70] sm:$0xff] %vm1329_vm7, %v1262_v63  ;;  %2427 = vmatpush.msra.mxu2 %v1974_v56  ;;  %v1383_v63 = vld [vmem:[#allocation2 + $0x120] sm:$0xff]  ;;  %2428 = vmatpush.msra.mxu3 %v1974_v56 }
 0x226   : > { %v1266_v12 = vpop.permute.xlu0 %1265  ;;  %1620 = vrot.lane.b32.xlu2 %v1556_v1, %s2494_s26  ;;  %2099 = vmatpush.msra.mxu0 %v1974_v56 }
 0x227   : > { %1346 = vst.msk [vmem:[#allocation3 + $0x80] sm:$0xff] %vm1329_vm7, %v1266_v12  ;;  %2426 = vmatpush.msra.mxu1 %v1974_v56 }
 0x228   : > { %v1276_v9 = vpop.permute.xlu2 %1275 }
 0x229   : > { %1351 = vst.msk [vmem:[#allocation3 + $0xa8] sm:$0xff] %vm1329_vm7, %v1276_v9  ;;  %v1559_v9 = vld [vmem:[#allocation2 + $0x51] sm:$0xff] }
 0x22a   : > { %1829 = vrot.lane.b32.xlu1 %v1757_v59, %s2495_s27  ;;  %v1752_v59 = vld [vmem:[#allocation2 + $0x52] sm:$0xff] }
 0x22c   : > { %1670 = vrot.lane.b32.xlu0 %v1581_v3, %s2494_s26  ;;  %v1268_v50 = vpop.permute.xlu1 %1267 }
 0x22d   : > { %1347 = vst.msk [vmem:[#allocation3 + $0x88] sm:$0xff] %vm1329_vm7, %v1268_v50 }
 0x22e   : > { %v1272_v19 = vpop.permute.xlu0 %1271  ;;  %1477 = vrot.lane.b32.xlu2 %v3010_v41, %s2493_s25  ;;  %v1565_v41 = vld [vmem:[#allocation2 + $0x99] sm:$0xff] }
 0x22f   : > { %1349 = vst.msk [vmem:[#allocation3 + $0x98] sm:$0xff] %vm1329_vm7, %v1272_v19  ;;  %v1760_v19 = vld [vmem:[#allocation2 + $0xb2] sm:$0xff] }
 0x230   : > { %v1282_v40 = vpop.permute.xlu2 %1281 }
 0x231   : > { %1354 = vst.msk [vmem:[#allocation3 + $0xc0] sm:$0xff] %vm1329_vm7, %v1282_v40  ;;  %v1391_v40 = vld [vmem:[#allocation2 + $0x180] sm:$0xff] }
 0x232   : > { %1847 = vrot.lane.b32.xlu1 %v1766_v62, %s2495_s27 }
 0x234   : > { %1622 = vrot.lane.b32.xlu0 %v1557_v0, %s2494_s26  ;;  %v1274_v38 = vpop.permute.xlu1 %1273 }
 0x235   : > { %1350 = vst.msk [vmem:[#allocation3 + $0xa0] sm:$0xff] %vm1329_vm7, %v1274_v38  ;;  %v1769_v38 = vld [vmem:[#allocation2 + $0x122] sm:$0xff] }
 0x236   : > { %v1278_v10 = vpop.permute.xlu0 %1277  ;;  %1654 = vrot.lane.b32.xlu2 %v1573_v54, %s2494_s26 }
 0x237   : > { %1352 = vst.msk [vmem:[#allocation3 + $0xb0] sm:$0xff] %vm1329_vm7, %v1278_v10 }
 0x238   : > { %v1288_v20 = vpop.permute.xlu2 %1287 }
 0x239   : > { %1357 = vst.msk [vmem:[#allocation3 + $0xd8] sm:$0xff] %vm1329_vm7, %v1288_v20  ;;  %v1576_v20 = vld [vmem:[#allocation2 + $0x121] sm:$0xff] }
 0x23a   : > { %1638 = vrot.lane.b32.xlu1 %v1565_v41, %s2494_s26  ;;  %v1560_v41 = vld [vmem:[#allocation2 + $0x61] sm:$0xff] }
 0x23c   : > { %1479 = vrot.lane.b32.xlu0 %v3001_v6, %s2493_s25  ;;  %v1280_v32 = vpop.permute.xlu1 %1279 }
 0x23d   : > { %1353 = vst.msk [vmem:[#allocation3 + $0xb8] sm:$0xff] %vm1329_vm7, %v1280_v32  ;;  %v1568_v32 = vld [vmem:[#allocation2 + $0xc1] sm:$0xff] }
 0x23e   : > { %v1284_v14 = vpop.permute.xlu0 %1283  ;;  %1863 = vrot.lane.b32.xlu2 %v1774_v22, %s2495_s27 }
 0x23f   : > { %1355 = vst.msk [vmem:[#allocation3 + $0xc8] sm:$0xff] %vm1329_vm7, %v1284_v14 }
 0x240   : > { %v1294_v13 = vpop.permute.xlu2 %1293 }
 0x241   : > { %1360 = vst.msk [vmem:[#allocation3 + $0xf0] sm:$0xff] %vm1329_vm7, %v1294_v13 }
 0x242   : > { %1815 = vrot.lane.b32.xlu1 %v1750_v58, %s2495_s27 }
 0x244   : > { %1656 = vrot.lane.b32.xlu0 %v1574_v4, %s2494_s26  ;;  %v1286_v15 = vpop.permute.xlu1 %1285 }
 0x245   : > { %1356 = vst.msk [vmem:[#allocation3 + $0xd0] sm:$0xff] %vm1329_vm7, %v1286_v15 }
 0x246   : > { %v1290_v6 = vpop.permute.xlu0 %1289  ;;  %1463 = vrot.lane.b32.xlu2 %v1381_v61, %s2493_s25  ;;  %v1753_v61 = vld [vmem:[#allocation2 + $0x62] sm:$0xff] }
 0x247   : > { %1358 = vst.msk [vmem:[#allocation3 + $0xe0] sm:$0xff] %vm1329_vm7, %v1290_v6  ;;  %v1577_v6 = vld [vmem:[#allocation2 + $0x129] sm:$0xff] }
 0x248   : > { %v1430_v5 = vpop.permute.xlu2 %1429 }
 0x249   : > { %1525 = vst.msk [vmem:[#allocation3 + $0x8] sm:$0xff] %vm1523_vm8, %v1430_v5 }
 0x24a   : > { %1672 = vrot.lane.b32.xlu1 %v1582_v27, %s2494_s26  ;;  %v1384_v27 = vld [vmem:[#allocation2 + $0x128] sm:$0xff] }
 0x24c   : > { %1865 = vrot.lane.b32.xlu0 %v1775_v18, %s2495_s27  ;;  %v1292_v16 = vpop.permute.xlu1 %1291 }
 0x24d   : > { %1359 = vst.msk [vmem:[#allocation3 + $0xe8] sm:$0xff] %vm1329_vm7, %v1292_v16 }
 0x24e   : > { %v1296_v17 = vpop.permute.xlu0 %1295  ;;  %1831 = vrot.lane.b32.xlu2 %v1758_v33, %s2495_s27  ;;  %v1761_v33 = vld [vmem:[#allocation2 + $0xc2] sm:$0xff] }
 0x24f   : > { %1361 = vst.msk [vmem:[#allocation3 + $0xf8] sm:$0xff] %vm1329_vm7, %v1296_v17 }
 0x250   : > { %v1436_v25 = vpop.permute.xlu2 %1435 }
 0x251   : > { %1528 = vst.msk [vmem:[#allocation3 + $0x20] sm:$0xff] %vm1523_vm8, %v1436_v25  ;;  %v1561_v25 = vld [vmem:[#allocation2 + $0x69] sm:$0xff] }
 0x252   : > { %1624 = vrot.lane.b32.xlu1 %v1558_v23, %s2494_s26 }
 0x254   : > { %1465 = vrot.lane.b32.xlu0 %v1382_v39, %s2493_s25  ;;  %v1428_v29 = vpop.permute.xlu1 %1427 }
 0x255   : > { %1524 = vst.msk [vmem:[#allocation3] sm:$0xff] %vm1523_vm8, %v1428_v29 }
 0x256   : > { %v1432_v24 = vpop.permute.xlu0 %1431  ;;  %1849 = vrot.lane.b32.xlu2 %v1767_v28, %s2495_s27 }
 0x257   : > { %1526 = vst.msk [vmem:[#allocation3 + $0x10] sm:$0xff] %vm1523_vm8, %v1432_v24 }
 0x258   : > { %v1442_v44 = vpop.permute.xlu2 %1441 }
 0x259   : > { %1531 = vst.msk [vmem:[#allocation3 + $0x38] sm:$0xff] %vm1523_vm8, %v1442_v44 }
 0x25a   : > { %1481 = vrot.lane.b32.xlu1 %v1390_v31, %s2493_s25  ;;  %v1393_v31 = vld [vmem:[#allocation2 + $0x198] sm:$0xff] }
 0x25c   : > { %1833 = vrot.lane.b32.xlu0 %v1759_v46, %s2495_s27  ;;  %v1434_v30 = vpop.permute.xlu1 %1433 }
 0x25d   : > { %1527 = vst.msk [vmem:[#allocation3 + $0x18] sm:$0xff] %vm1523_vm8, %v1434_v30  ;;  %v1569_v30 = vld [vmem:[#allocation2 + $0xc9] sm:$0xff] }
 0x25e   : > { %v1438_v21 = vpop.permute.xlu0 %1437  ;;  %1640 = vrot.lane.b32.xlu2 %v1566_v45, %s2494_s26  ;;  %v1762_v45 = vld [vmem:[#allocation2 + $0xca] sm:$0xff] }
 0x25f   : > { %1529 = vst.msk [vmem:[#allocation3 + $0x28] sm:$0xff] %vm1523_vm8, %v1438_v21 }
 0x260   : > { %v1448_v37 = vpop.permute.xlu2 %1447 }
 0x261   : > { %1534 = vst.msk [vmem:[#allocation3 + $0x50] sm:$0xff] %vm1523_vm8, %v1448_v37 }
 0x262   : > { %1658 = vrot.lane.b32.xlu1 %v1575_v35, %s2494_s26 }
 0x264   : > { %1851 = vrot.lane.b32.xlu0 %v1768_v49, %s2495_s27  ;;  %v1440_v34 = vpop.permute.xlu1 %1439  ;;  %v1578_v49 = vld [vmem:[#allocation2 + $0x139] sm:$0xff] }
 0x265   : > { %1530 = vst.msk [vmem:[#allocation3 + $0x30] sm:$0xff] %vm1523_vm8, %v1440_v34  ;;  %v1771_v34 = vld [vmem:[#allocation2 + $0x13a] sm:$0xff] }
 0x266   : > { %v1444_v43 = vpop.permute.xlu0 %1443  ;;  %1817 = vrot.lane.b32.xlu2 %v1751_v36, %s2495_s27 }
 0x267   : > { %1532 = vst.msk [vmem:[#allocation3 + $0x40] sm:$0xff] %vm1523_vm8, %v1444_v43 }
 0x268   : > { %v1454_v57 = vpop.permute.xlu2 %1453 }
 0x269   : > { %1537 = vst.msk [vmem:[#allocation3 + $0x68] sm:$0xff] %vm1523_vm8, %v1454_v57 }
 0x26a   : > { %1867 = vrot.lane.b32.xlu1 %v1776_v53, %s2495_s27 }
 0x26c   : > { %1642 = vrot.lane.b32.xlu0 %v1567_v47, %s2494_s26  ;;  %v1446_v51 = vpop.permute.xlu1 %1445  ;;  %v1570_v47 = vld [vmem:[#allocation2 + $0xd9] sm:$0xff] }
 0x26d   : > { %1533 = vst.msk [vmem:[#allocation3 + $0x48] sm:$0xff] %vm1523_vm8, %v1446_v51 }
 0x26e   : > { %v1450_v1 = vpop.permute.xlu0 %1449  ;;  %1674 = vrot.lane.b32.xlu2 %v1583_v60, %s2494_s26 }
 0x26f   : > { %1535 = vst.msk [vmem:[#allocation3 + $0x58] sm:$0xff] %vm1523_vm8, %v1450_v1  ;;  %v1386_v1 = vld [vmem:[#allocation2 + $0x140] sm:$0xff] }
 0x270   : > { %v1460_v12 = vpop.permute.xlu2 %1459 }
 0x271   : > { %1540 = vst.msk [vmem:[#allocation3 + $0x80] sm:$0xff] %vm1523_vm8, %v1460_v12 }
 0x272   : > { %1467 = vrot.lane.b32.xlu1 %v1383_v63, %s2493_s25 }
 0x274   : > { %1819 = vrot.lane.b32.xlu0 %v1752_v59, %s2495_s27  ;;  %v1452_v3 = vpop.permute.xlu1 %1451  ;;  %v1755_v59 = vld [vmem:[#allocation2 + $0x7a] sm:$0xff] }
 0x275   : > { %1536 = vst.msk [vmem:[#allocation3 + $0x60] sm:$0xff] %vm1523_vm8, %v1452_v3 }
 0x276   : > { %v1456_v50 = vpop.permute.xlu0 %1455  ;;  %1626 = vrot.lane.b32.xlu2 %v1559_v9, %s2494_s26  ;;  %v1562_v9 = vld [vmem:[#allocation2 + $0x79] sm:$0xff] }
 0x277   : > { %1538 = vst.msk [vmem:[#allocation3 + $0x70] sm:$0xff] %vm1523_vm8, %v1456_v50 }
 0x278   : > { %v1669_v62 = vpop.permute.xlu2 %1668 }
 0x27a   : > { %1835 = vrot.lane.b32.xlu1 %v1760_v19, %s2495_s27 }
 0x27c   : > { %1676 = vrot.lane.b32.xlu0 %v3220_v11, %s2494_s26  ;;  %v1458_v0 = vpop.permute.xlu1 %1457 }
 0x27d   : > { %1539 = vst.msk [vmem:[#allocation3 + $0x78] sm:$0xff] %vm1523_vm8, %v1458_v0  ;;  %v1587_v0 = vld [vmem:[#allocation2 + $0x1a1] sm:$0xff] }
 0x27e   : > { %v1476_v54 = vpop.permute.xlu0 %1475  ;;  %1483 = vrot.lane.b32.xlu2 %v1391_v40, %s2493_s25 }
 0x27f   : > { %1548 = vst.msk [vmem:[#allocation3 + $0xc0] sm:$0xff] %vm1523_vm8, %v1476_v54  ;;  %v1394_v54 = vld [vmem:[#allocation2 + $0x1a0] sm:$0xff] }
 0x280   : > { %1741 = vst.msk [vmem:[#allocation3 + $0xc0] sm:$0xff] %vm1716_vm10, %v1669_v62  ;;  %v1621_v10 = vpop.permute.xlu2 %1620  ;;  %v1763_v62 = vld [vmem:[#allocation2 + $0xda] sm:$0xff] }
 0x281   : > { %1717 = vst.msk [vmem:[#allocation3] sm:$0xff] %vm1716_vm10, %v1621_v10 }
 0x282   : > { %1853 = vrot.lane.b32.xlu1 %v1769_v38, %s2495_s27 }
 0x284   : > { %1628 = vrot.lane.b32.xlu0 %v1560_v41, %s2494_s26  ;;  %v1653_v11 = vpop.permute.xlu1 %1652 }
 0x285   : > { %1733 = vst.msk [vmem:[#allocation3 + $0x80] sm:$0xff] %vm1716_vm10, %v1653_v11 }
 0x286   : > { %v1846_v22 = vpop.permute.xlu0 %1845  ;;  %1660 = vrot.lane.b32.xlu2 %v1576_v20, %s2494_s26  ;;  %v1772_v20 = vld [vmem:[#allocation2 + $0x142] sm:$0xff] }
 0x287   : > { %1926 = vst.msk [vmem:[#allocation3 + $0x80] sm:$0xff] %vm1909_vm11, %v1846_v22  ;;  %v1563_v22 = vld [vmem:[#allocation2 + $0x81] sm:$0xff] }
 0x288   : > { %v1478_v14 = vpop.permute.xlu2 %1477 }
 0x289   : > { %1549 = vst.msk [vmem:[#allocation3 + $0xc8] sm:$0xff] %vm1523_vm8, %v1478_v14 }
 0x28a   : > { %1644 = vrot.lane.b32.xlu1 %v1568_v32, %s2494_s26  ;;  %v1579_v32 = vld [vmem:[#allocation2 + $0x141] sm:$0xff] }
 0x28c   : > { %1485 = vrot.lane.b32.xlu0 %v3140_v2, %s2493_s25  ;;  %v1862_v58 = vpop.permute.xlu1 %1861 }
 0x28d   : > { %1934 = vst.msk [vmem:[#allocation3 + $0xc0] sm:$0xff] %vm1909_vm11, %v1862_v58 }
 0x28e   : > { %v1637_v13 = vpop.permute.xlu0 %1636  ;;  %v1958_v4 = vld [vmem:[#allocation3 + $0x80] sm:$0xff]  ;;  %1869 = vrot.lane.b32.xlu2 %v3336_v7, %s2495_s27 }
 0x28f   : > { %1725 = vst.msk [vmem:[#allocation3 + $0x40] sm:$0xff] %vm1716_vm10, %v1637_v13  ;;  %2394 = vmatmul.msk.f32.vlgmr.msra.gmra.mxu2 %vm1983_vm12, %v1958_v4  ;;  %v1571_v4 = vld [vmem:[#allocation2 + $0xe1] sm:$0xff] }
 0x290   : > { %v1655_v15 = vpop.permute.xlu2 %1654 }
 0x292   : > { %1821 = vrot.lane.b32.xlu1 %v1753_v61, %s2495_s27 }
 0x294   : > { %1662 = vrot.lane.b32.xlu0 %v1577_v6, %s2494_s26  ;;  %v1462_v2 = vpop.permute.xlu1 %1461  ;;  %v1966_v5 = vld [vmem:[#allocation3 + $0xc0] sm:$0xff]  ;;  %v1780_v6 = vld [vmem:[#allocation2 + $0x1a2] sm:$0xff] }
 0x295   : > { %1541 = vst.msk [vmem:[#allocation3 + $0x88] sm:$0xff] %vm1523_vm8, %v1462_v2  ;;  %2402 = vmatmul.msk.f32.vlgmr.msra.gmra.mxu3 %vm1983_vm12, %v1966_v5 }
 0x296   : > { %v1814_v18 = vpop.permute.xlu0 %1813  ;;  %1734 = vst.msk [vmem:[#allocation3 + $0x88] sm:$0xff] %vm1716_vm10, %v1655_v15  ;;  %1469 = vrot.lane.b32.xlu2 %v1384_v27, %s2493_s25  ;;  %v1764_v15 = vld [vmem:[#allocation2 + $0xe2] sm:$0xff] }
 0x297   : > { %1910 = vst.msk [vmem:[#allocation3] sm:$0xff] %vm1909_vm11, %v1814_v18 }
 0x298   : > { %v1864_v7 = vpop.permute.xlu2 %1863 }
 0x29a   : > { %1678 = vrot.lane.b32.xlu1 %v3231_v55, %s2494_s26  ;;  %v1385_v55 = vld [vmem:[#allocation2 + $0x138] sm:$0xff] }
 0x29c   : > { %1871 = vrot.lane.b32.xlu0 %v3323_v8, %s2495_s27  ;;  %v1830_v16 = vpop.permute.xlu1 %1829  ;;  %v1770_v8 = vld [vmem:[#allocation2 + $0x12a] sm:$0xff] }
 0x29d   : > { %1918 = vst.msk [vmem:[#allocation3 + $0x40] sm:$0xff] %vm1909_vm11, %v1830_v16 }
 0x29e   : > { %v1671_v17 = vpop.permute.xlu0 %1670  ;;  %v1942_v23 = vld [vmem:[#allocation3] sm:$0xff]  ;;  %1837 = vrot.lane.b32.xlu2 %v1761_v33, %s2495_s27 }
 0x29f   : > { %1742 = vst.msk [vmem:[#allocation3 + $0xc8] sm:$0xff] %vm1716_vm10, %v1671_v17  ;;  %2378 = vmatmul.msk.f32.vlgmr.msra.gmra.mxu0 %vm1983_vm12, %v1942_v23 }
 0x2a0   : > { %1935 = vst.msk [vmem:[#allocation3 + $0xc8] sm:$0xff] %vm1909_vm11, %v1864_v7  ;;  %v1464_v39 = vpop.permute.xlu2 %1463  ;;  %v1756_v7 = vld [vmem:[#allocation2 + $0x82] sm:$0xff] }
 0x2a1   : > { %1542 = vst.msk [vmem:[#allocation3 + $0x90] sm:$0xff] %vm1523_vm8, %v1464_v39 }
 0x2a2   : > { %1630 = vrot.lane.b32.xlu1 %v1561_v25, %s2494_s26 }
 0x2a4   : > { %1471 = vrot.lane.b32.xlu0 %v1385_v55, %s2493_s25  ;;  %v1848_v28 = vpop.permute.xlu1 %1847  ;;  %v1950_v29 = vld [vmem:[#allocation3 + $0x40] sm:$0xff] }
 0x2a5   : > { %1927 = vst.msk [vmem:[#allocation3 + $0x88] sm:$0xff] %vm1909_vm11, %v1848_v28  ;;  %2386 = vmatmul.msk.f32.vlgmr.msra.gmra.mxu1 %vm1983_vm12, %v1950_v29 }
 0x2a6   : > { %v1623_v24 = vpop.permute.xlu0 %1622  ;;  %1855 = vrot.lane.b32.xlu2 %v1770_v8, %s2495_s27 }
 0x2a7   : > { %1718 = vst.msk [vmem:[#allocation3 + $0x8] sm:$0xff] %vm1716_vm10, %v1623_v24  ;;  %v1967_v44 = vld [vmem:[#allocation3 + $0xc8] sm:$0xff] }
 0x2a8   : > { %2403 = vmatmul.msk.f32.gmra.mxu3 %vm1983_vm12, %v1967_v44  ;;  %v1832_v46 = vpop.permute.xlu2 %1831 }
 0x2aa   : > { %1487 = vrot.lane.b32.xlu1 %v1393_v31, %s2493_s25 }
 0x2ac   : > { %1839 = vrot.lane.b32.xlu0 %v1762_v45, %s2495_s27  ;;  %v1639_v21 = vpop.permute.xlu1 %1638  ;;  %v1959_v35 = vld [vmem:[#allocation3 + $0x88] sm:$0xff] }
 0x2ad   : > { %1726 = vst.msk [vmem:[#allocation3 + $0x48] sm:$0xff] %vm1716_vm10, %v1639_v21  ;;  %2395 = vmatmul.msk.f32.gmra.mxu2 %vm1983_vm12, %v1959_v35 }
 0x2ae   : > { %v1480_v37 = vpop.permute.xlu0 %1479  ;;  %1919 = vst.msk [vmem:[#allocation3 + $0x48] sm:$0xff] %vm1909_vm11, %v1832_v46  ;;  %1646 = vrot.lane.b32.xlu2 %v1569_v30, %s2494_s26 }
 0x2af   : > { %1550 = vst.msk [vmem:[#allocation3 + $0xd0] sm:$0xff] %vm1523_vm8, %v1480_v37 }
 0x2b0   : > { %v1850_v36 = vpop.permute.xlu2 %1849 }
 0x2b2   : > { %1664 = vrot.lane.b32.xlu1 %v1578_v49, %s2494_s26 }
 0x2b4   : > { %1857 = vrot.lane.b32.xlu0 %v1771_v34, %s2495_s27  ;;  %v1816_v43 = vpop.permute.xlu1 %1815 }
 0x2b5   : > { %1911 = vst.msk [vmem:[#allocation3 + $0x8] sm:$0xff] %vm1909_vm11, %v1816_v43  ;;  %v1951_v53 = vld [vmem:[#allocation3 + $0x48] sm:$0xff] }
 0x2b6   : > { %v1657_v42 = vpop.permute.xlu0 %1656  ;;  %2387 = vmatmul.msk.f32.gmra.mxu1 %vm1983_vm12, %v1951_v53  ;;  %1823 = vrot.lane.b32.xlu2 %v1754_v26, %s2495_s27  ;;  %v3603_v53 = vld [vmem:[%s3754_s2] ss:$0 sm:$0xff] }
 0x2b7   : > { %1735 = vst.msk [vmem:[#allocation3 + $0x90] sm:$0xff] %vm1716_vm10, %v1657_v42 }
 0x2b8   : > { %1928 = vst.msk [vmem:[#allocation3 + $0x90] sm:$0xff] %vm1909_vm11, %v1850_v36  ;;  %v1641_v57 = vpop.permute.xlu2 %1640 }
 0x2b9   : > { %1727 = vst.msk [vmem:[#allocation3 + $0x50] sm:$0xff] %vm1716_vm10, %v1641_v57 }
 0x2ba   : > { %1873 = vrot.lane.b32.xlu1 %v1779_v48, %s2495_s27 }
 0x2bc   : > { %1648 = vrot.lane.b32.xlu0 %v1570_v47, %s2494_s26  ;;  %v1673_v60 = vpop.permute.xlu1 %1672  ;;  %v1943_v51 = vld [vmem:[#allocation3 + $0x8] sm:$0xff] }
 0x2bd   : > { %1743 = vst.msk [vmem:[#allocation3 + $0xd0] sm:$0xff] %vm1716_vm10, %v1673_v60  ;;  %2379 = vmatmul.msk.f32.gmra.mxu0 %vm1983_vm12, %v1943_v51 }
 0x2be   : > { %v1866_v56 = vpop.permute.xlu0 %1865  ;;  %1680 = vrot.lane.b32.xlu2 %v1586_v52, %s2494_s26 }
 0x2bf   : > { %1936 = vst.msk [vmem:[#allocation3 + $0xd0] sm:$0xff] %vm1909_vm11, %v1866_v56  ;;  %v1960_v63 = vld [vmem:[#allocation3 + $0x90] sm:$0xff] }
 0x2c0   : > { %2396 = vmatmul.msk.f32.gmra.mxu2 %vm1983_vm12, %v1960_v63  ;;  %v1818_v12 = vpop.permute.xlu2 %1817 }
 0x2c2   : > { %1473 = vrot.lane.b32.xlu1 %v1386_v1, %s2493_s25 }
 0x2c4   : > { %1825 = vrot.lane.b32.xlu0 %v1755_v59, %s2495_s27  ;;  %v1625_v3 = vpop.permute.xlu1 %1624 }
 0x2c5   : > { %1719 = vst.msk [vmem:[#allocation3 + $0x10] sm:$0xff] %vm1716_vm10, %v1625_v3 }
 0x2c6   : > { %v1466_v50 = vpop.permute.xlu0 %1465  ;;  %v1968_v19 = vld [vmem:[#allocation3 + $0xd0] sm:$0xff]  ;;  %1912 = vst.msk [vmem:[#allocation3 + $0x10] sm:$0xff] %vm1909_vm11, %v1818_v12  ;;  %1632 = vrot.lane.b32.xlu2 %v1562_v9, %s2494_s26 }
 0x2c7   : > { %1543 = vst.msk [vmem:[#allocation3 + $0x98] sm:$0xff] %vm1523_vm8, %v1466_v50  ;;  %2404 = vmatmul.msk.f32.gmra.mxu3 %vm1983_vm12, %v1968_v19 }
 0x2c8   : > { %v1675_v40 = vpop.permute.xlu2 %1674 }
 0x2ca   : > { %1841 = vrot.lane.b32.xlu1 %v1763_v62, %s2495_s27 }
 0x2cc   : > { %1682 = vrot.lane.b32.xlu0 %v1587_v0, %s2494_s26  ;;  %v1482_v38 = vpop.permute.xlu1 %1481 }
 0x2cd   : > { %1551 = vst.msk [vmem:[#allocation3 + $0xd8] sm:$0xff] %vm1523_vm8, %v1482_v38  ;;  %v1944_v10 = vld [vmem:[#allocation3 + $0x10] sm:$0xff] }
 0x2ce   : > { %v1834_v41 = vpop.permute.xlu0 %1833  ;;  %1744 = vst.msk [vmem:[#allocation3 + $0xd8] sm:$0xff] %vm1716_vm10, %v1675_v40  ;;  %2380 = vmatmul.msk.f32.gmra.mxu0 %vm1983_vm12, %v1944_v10  ;;  %1489 = vrot.lane.b32.xlu2 %v1394_v54, %s2493_s25 }
 0x2cf   : > { %1920 = vst.msk [vmem:[#allocation3 + $0x50] sm:$0xff] %vm1909_vm11, %v1834_v41 }
 0x2d0   : > { %v1627_v11 = vpop.permute.xlu2 %1626 }
 0x2d1   : > { %1720 = vst.msk [vmem:[#allocation3 + $0x18] sm:$0xff] %vm1716_vm10, %v1627_v11 }
 0x2d2   : > { %1859 = vrot.lane.b32.xlu1 %v1772_v20, %s2495_s27 }
 0x2d4   : > { %1634 = vrot.lane.b32.xlu0 %v1563_v22, %s2494_s26  ;;  %v1659_v14 = vpop.permute.xlu1 %1658 }
 0x2d5   : > { %1736 = vst.msk [vmem:[#allocation3 + $0x98] sm:$0xff] %vm1716_vm10, %v1659_v14 }
 0x2d6   : > { %v1852_v58 = vpop.permute.xlu0 %1851  ;;  %v1952_v13 = vld [vmem:[#allocation3 + $0x50] sm:$0xff]  ;;  %1666 = vrot.lane.b32.xlu2 %v1579_v32, %s2494_s26 }
 0x2d7   : > { %1929 = vst.msk [vmem:[#allocation3 + $0x98] sm:$0xff] %vm1909_vm11, %v1852_v58  ;;  %2388 = vmatmul.msk.f32.gmra.mxu1 %vm1983_vm12, %v1952_v13 }
 0x2d8   : > { %v1484_v61 = vpop.permute.xlu2 %1483 }
 0x2d9   : > { %1552 = vst.msk [vmem:[#allocation3 + $0xe0] sm:$0xff] %vm1523_vm8, %v1484_v61 }
 0x2da   : > { %1650 = vrot.lane.b32.xlu1 %v1571_v4, %s2494_s26 }
 0x2dc   : > { %1843 = vrot.lane.b32.xlu0 %v1764_v15, %s2495_s27  ;;  %v1868_v27 = vpop.permute.xlu1 %1867 }
 0x2dd   : > { %1937 = vst.msk [vmem:[#allocation3 + $0xd8] sm:$0xff] %vm1909_vm11, %v1868_v27 }
 0x2de   : > { %v1643_v2 = vpop.permute.xlu0 %1642  ;;  %v1961_v5 = vld [vmem:[#allocation3 + $0x98] sm:$0xff]  ;;  %1875 = vrot.lane.b32.xlu2 %v1780_v6, %s2495_s27 }
 0x2df   : > { %1728 = vst.msk [vmem:[#allocation3 + $0x58] sm:$0xff] %vm1716_vm10, %v1643_v2  ;;  %2397 = vmatmul.msk.f32.gmra.mxu2 %vm1983_vm12, %v1961_v5 }
 0x2e0   : > { %v1661_v18 = vpop.permute.xlu2 %1660 }
 0x2e4   : > { %v1468_v33 = vpop.permute.xlu1 %1467  ;;  %v1969_v16 = vld [vmem:[#allocation3 + $0xd8] sm:$0xff] }
 0x2e5   : > { %1544 = vst.msk [vmem:[#allocation3 + $0xa0] sm:$0xff] %vm1523_vm8, %v1468_v33  ;;  %2405 = vmatmul.msk.f32.gmra.mxu3 %vm1983_vm12, %v1969_v16 }
 0x2e6   : > { %v1820_v17 = vpop.permute.xlu0 %1819  ;;  %1737 = vst.msk [vmem:[#allocation3 + $0xa0] sm:$0xff] %vm1716_vm10, %v1661_v18  ;;  %1827 = vrot.lane.b32.xlu2 %v1756_v7, %s2495_s27 }
 0x2e7   : > { %1913 = vst.msk [vmem:[#allocation3 + $0x18] sm:$0xff] %vm1909_vm11, %v1820_v17 }
 0x2e8   : > { %v1870_v23 = vpop.permute.xlu2 %1869 }
 0x2ec   : > { %v1836_v25 = vpop.permute.xlu1 %1835 }
 0x2ed   : > { %1921 = vst.msk [vmem:[#allocation3 + $0x58] sm:$0xff] %vm1909_vm11, %v1836_v25 }
 0x2ee   : > { %v1677_v39 = vpop.permute.xlu0 %1676  ;;  %v1945_v55 = vld [vmem:[#allocation3 + $0x18] sm:$0xff] }
 0x2ef   : > { %1745 = vst.msk [vmem:[#allocation3 + $0xe0] sm:$0xff] %vm1716_vm10, %v1677_v39  ;;  %2381 = vmatmul.msk.f32.gmra.mxu0 %vm1983_vm12, %v1945_v55 }
 0x2f0   : > { %1938 = vst.msk [vmem:[#allocation3 + $0xe0] sm:$0xff] %vm1909_vm11, %v1870_v23  ;;  %v1470_v8 = vpop.permute.xlu2 %1469 }
 0x2f1   : > { %1545 = vst.msk [vmem:[#allocation3 + $0xa8] sm:$0xff] %vm1523_vm8, %v1470_v8 }
 0x2f4   : > { %v1854_v28 = vpop.permute.xlu1 %1853  ;;  %v1953_v29 = vld [vmem:[#allocation3 + $0x58] sm:$0xff] }
 0x2f5   : > { %1930 = vst.msk [vmem:[#allocation3 + $0xa0] sm:$0xff] %vm1909_vm11, %v1854_v28  ;;  %2389 = vmatmul.msk.f32.gmra.mxu1 %vm1983_vm12, %v1953_v29 }
 0x2f6   : > { %v1629_v24 = vpop.permute.xlu0 %1628 }
 0x2f7   : > { %1721 = vst.msk [vmem:[#allocation3 + $0x20] sm:$0xff] %vm1716_vm10, %v1629_v24  ;;  %v1970_v31 = vld [vmem:[#allocation3 + $0xe0] sm:$0xff] }
 0x2f8   : > { %2406 = vmatmul.msk.f32.gmra.mxu3 %vm1983_vm12, %v1970_v31  ;;  %v1838_v44 = vpop.permute.xlu2 %1837 }
 0x2fc   : > { %v1645_v46 = vpop.permute.xlu1 %1644  ;;  %v1962_v45 = vld [vmem:[#allocation3 + $0xa0] sm:$0xff] }
 0x2fd   : > { %1729 = vst.msk [vmem:[#allocation3 + $0x60] sm:$0xff] %vm1716_vm10, %v1645_v46  ;;  %2398 = vmatmul.msk.f32.gmra.mxu2 %vm1983_vm12, %v1962_v45 }
 0x2fe   : > { %v1486_v30 = vpop.permute.xlu0 %1485  ;;  %1922 = vst.msk [vmem:[#allocation3 + $0x60] sm:$0xff] %vm1909_vm11, %v1838_v44 }
 0x2ff   : > { %1553 = vst.msk [vmem:[#allocation3 + $0xe8] sm:$0xff] %vm1523_vm8, %v1486_v30 }
 0x300   : > { %v1856_v21 = vpop.permute.xlu2 %1855 }
 0x304   : > { %v1822_v35 = vpop.permute.xlu1 %1821 }
 0x305   : > { %1914 = vst.msk [vmem:[#allocation3 + $0x20] sm:$0xff] %vm1909_vm11, %v1822_v35  ;;  %v1954_v37 = vld [vmem:[#allocation3 + $0x60] sm:$0xff] }
 0x306   : > { %v1663_v49 = vpop.permute.xlu0 %1662  ;;  %2390 = vmatmul.msk.f32.gmra.mxu1 %vm1983_vm12, %v1954_v37 }
 0x307   : > { %1738 = vst.msk [vmem:[#allocation3 + $0xa8] sm:$0xff] %vm1716_vm10, %v1663_v49 }
 0x308   : > { %1931 = vst.msk [vmem:[#allocation3 + $0xa8] sm:$0xff] %vm1909_vm11, %v1856_v21  ;;  %v1647_v36 = vpop.permute.xlu2 %1646 }
 0x309   : > { %1730 = vst.msk [vmem:[#allocation3 + $0x68] sm:$0xff] %vm1716_vm10, %v1647_v36 }
 0x30c   : > { %v1679_v34 = vpop.permute.xlu1 %1678  ;;  %v1946_v26 = vld [vmem:[#allocation3 + $0x20] sm:$0xff] }
 0x30d   : > { %1746 = vst.msk [vmem:[#allocation3 + $0xe8] sm:$0xff] %vm1716_vm10, %v1679_v34  ;;  %2382 = vmatmul.msk.f32.gmra.mxu0 %vm1983_vm12, %v1946_v26 }
 0x30e   : > { %v1872_v43 = vpop.permute.xlu0 %1871 }
 0x30f   : > { %1939 = vst.msk [vmem:[#allocation3 + $0xe8] sm:$0xff] %vm1909_vm11, %v1872_v43  ;;  %v1963_v42 = vld [vmem:[#allocation3 + $0xa8] sm:$0xff] }
 0x310   : > { %2399 = vmatmul.msk.f32.gmra.mxu2 %vm1983_vm12, %v1963_v42  ;;  %v1824_v48 = vpop.permute.xlu2 %1823 }
 0x312   : > { %v2149_v57 = vpop.f32.mrf.mxu2 }
 0x313   : > { %v2150_v47 = vadd.f32 %v3603_v53, %v2149_v57 }
 0x314   : > { %v1631_v52 = vpop.permute.xlu1 %1630 }
 0x315   : > { %v2213_v60 = vmax.f32 %v2150_v47, 0.0  ;;  %1722 = vst.msk [vmem:[#allocation3 + $0x28] sm:$0xff] %vm1716_vm10, %v1631_v52 }
 0x316   : > { %v1472_v51 = vpop.permute.xlu0 %1471  ;;  %v1971_v56 = vld [vmem:[#allocation3 + $0xe8] sm:$0xff]  ;;  %1915 = vst.msk [vmem:[#allocation3 + $0x28] sm:$0xff] %vm1909_vm11, %v1824_v48 }
 0x317   : > { %2245 = vst.msk [vmem:[%s3612_s20 + $0x80] sm:$0xff] %vm222_vm0, %v2213_v60  ;;  %2407 = vmatmul.msk.f32.gmra.mxu3 %vm1983_vm12, %v1971_v56 }
 0x318   : > { %1546 = vst.msk [vmem:[#allocation3 + $0xb0] sm:$0xff] %vm1523_vm8, %v1472_v51  ;;  %v2173_v1 = vpop.f32.mrf.mxu3  ;;  %v1681_v63 = vpop.permute.xlu2 %1680 }
 0x319   : > { %v2174_v12 = vadd.f32 %v3603_v53, %v2173_v1 }
 0x31b   : > { %v2221_v59 = vmax.f32 %v2174_v12, 0.0 }
 0x31c   : > { %v2101_v9 = vpop.f32.mrf.mxu0  ;;  %v1488_v3 = vpop.permute.xlu1 %1487 }
 0x31d   : > { %2253 = vst.msk [vmem:[%s3612_s20 + $0xc0] sm:$0xff] %vm222_vm0, %v2221_v59  ;;  %v2102_v50 = vadd.f32 %v3603_v53, %v2101_v9  ;;  %v1947_v19 = vld [vmem:[#allocation3 + $0x28] sm:$0xff] }
 0x31e   : > { %1554 = vst.msk [vmem:[#allocation3 + $0xf0] sm:$0xff] %vm1523_vm8, %v1488_v3  ;;  %v1840_v62 = vpop.permute.xlu0 %1839  ;;  %2383 = vmatmul.msk.f32.gmra.mxu0 %vm1983_vm12, %v1947_v19 }
 0x31f   : > { %v2197_v40 = vmax.f32 %v2102_v50, 0.0  ;;  %1923 = vst.msk [vmem:[#allocation3 + $0x68] sm:$0xff] %vm1909_vm11, %v1840_v62 }
 0x320   : > { %1747 = vst.msk [vmem:[#allocation3 + $0xf0] sm:$0xff] %vm1716_vm10, %v1681_v63  ;;  %v1633_v0 = vpop.permute.xlu2 %1632 }
 0x321   : > { %2229 = vst.msk [vmem:[%s3612_s20] sm:$0xff] %vm222_vm0, %v2197_v40 }
 0x322   : > { %v2125_v54 = vpop.f32.mrf.mxu1  ;;  %1723 = vst.msk [vmem:[#allocation3 + $0x30] sm:$0xff] %vm1716_vm10, %v1633_v0 }
 0x323   : > { %v2126_v38 = vadd.f32 %v3603_v53, %v2125_v54 }
 0x324   : > { %v1665_v10 = vpop.permute.xlu1 %1664 }
 0x325   : > { %v2205_v41 = vmax.f32 %v2126_v38, 0.0  ;;  %1739 = vst.msk [vmem:[#allocation3 + $0xb0] sm:$0xff] %vm1716_vm10, %v1665_v10 }
 0x326   : > { %v1858_v20 = vpop.permute.xlu0 %1857  ;;  %v1955_v11 = vld [vmem:[#allocation3 + $0x68] sm:$0xff] }
 0x327   : > { %2237 = vst.msk [vmem:[%s3612_s20 + $0x40] sm:$0xff] %vm222_vm0, %v2205_v41  ;;  %2391 = vmatmul.msk.f32.gmra.mxu1 %vm1983_vm12, %v1955_v11 }
 0x328   : > { %1932 = vst.msk [vmem:[#allocation3 + $0xb0] sm:$0xff] %vm1909_vm11, %v1858_v20  ;;  %v1490_v22 = vpop.permute.xlu2 %1489 }
 0x329   : > { %1555 = vst.msk [vmem:[#allocation3 + $0xf8] sm:$0xff] %vm1523_vm8, %v1490_v22 }
 0x32b   : > { %v2176_v32 = vpop.f32.mrf.mxu3 }
 0x32c   : > { %v1874_v14 = vpop.permute.xlu1 %1873  ;;  %v2177_v58 = vadd.f32 %v3603_v53, %v2176_v32 }
 0x32d   : > { %1940 = vst.msk [vmem:[#allocation3 + $0xf0] sm:$0xff] %vm1909_vm11, %v1874_v14 }
 0x32e   : > { %v1649_v13 = vpop.permute.xlu0 %1648  ;;  %v2222_v4 = vmax.f32 %v2177_v58, 0.0 }
 0x32f   : > { %1731 = vst.msk [vmem:[#allocation3 + $0x70] sm:$0xff] %vm1716_vm10, %v1649_v13  ;;  %v1964_v61 = vld [vmem:[#allocation3 + $0xb0] sm:$0xff] }
 0x330   : > { %2400 = vmatmul.msk.f32.gmra.mxu2 %vm1983_vm12, %v1964_v61  ;;  %v2152_v15 = vpop.f32.mrf.mxu2  ;;  %2254 = vst.msk [vmem:[%s3612_s20 + $0xc8] sm:$0xff] %vm222_vm0, %v2222_v4  ;;  %v1667_v27 = vpop.permute.xlu2 %1666 }
 0x331   : > { %v2153_v6 = vadd.f32 %v3603_v53, %v2152_v15 }
 0x333   : > { %v2214_v2 = vmax.f32 %v2153_v6, 0.0  ;;  %v2128_v5 = vpop.f32.mrf.mxu1 }
 0x334   : > { %v1474_v18 = vpop.permute.xlu1 %1473  ;;  %v1972_v7 = vld [vmem:[#allocation3 + $0xf0] sm:$0xff]  ;;  %v2129_v33 = vadd.f32 %v3603_v53, %v2128_v5 }
 0x335   : > { %2246 = vst.msk [vmem:[%s3612_s20 + $0x88] sm:$0xff] %vm222_vm0, %v2214_v2  ;;  %2408 = vmatmul.msk.f32.gmra.mxu3 %vm1983_vm12, %v1972_v7 }
 0x336   : > { %1547 = vst.msk [vmem:[#allocation3 + $0xb8] sm:$0xff] %vm1523_vm8, %v1474_v18  ;;  %v1826_v16 = vpop.permute.xlu0 %1825  ;;  %v2206_v17 = vmax.f32 %v2129_v33, 0.0 }
 0x337   : > { %1916 = vst.msk [vmem:[#allocation3 + $0x30] sm:$0xff] %vm1909_vm11, %v1826_v16 }
 0x338   : > { %2238 = vst.msk [vmem:[%s3612_s20 + $0x48] sm:$0xff] %vm222_vm0, %v2206_v17  ;;  %v1876_v55 = vpop.permute.xlu2 %1875 }
 0x339   : > { %1740 = vst.msk [vmem:[#allocation3 + $0xb8] sm:$0xff] %vm1716_vm10, %v1667_v27 }
 0x33a   : > { %v2104_v23 = vpop.f32.mrf.mxu0 }
 0x33b   : > { %v2105_v25 = vadd.f32 %v3603_v53, %v2104_v23 }
 0x33c   : > { %v1842_v39 = vpop.permute.xlu1 %1841 }
 0x33d   : > { %v2198_v8 = vmax.f32 %v2105_v25, 0.0  ;;  %1924 = vst.msk [vmem:[#allocation3 + $0x70] sm:$0xff] %vm1909_vm11, %v1842_v39 }
 0x33e   : > { %v1683_v28 = vpop.permute.xlu0 %1682  ;;  %v1948_v29 = vld [vmem:[#allocation3 + $0x30] sm:$0xff] }
 0x33f   : > { %2230 = vst.msk [vmem:[%s3612_s20 + $0x8] sm:$0xff] %vm222_vm0, %v2198_v8  ;;  %2384 = vmatmul.msk.f32.gmra.mxu0 %vm1983_vm12, %v1948_v29 }
 0x340   : > { %1748 = vst.msk [vmem:[#allocation3 + $0xf8] sm:$0xff] %vm1716_vm10, %v1683_v28  ;;  %v1828_v21 = vpop.permute.xlu2 %1827 }
 0x341   : > { %1941 = vst.msk [vmem:[#allocation3 + $0xf8] sm:$0xff] %vm1909_vm11, %v1876_v55 }
 0x343   : > { %v2155_v24 = vpop.f32.mrf.mxu2 }
 0x344   : > { %v1860_v31 = vpop.permute.xlu1 %1859  ;;  %v1956_v44 = vld [vmem:[#allocation3 + $0x70] sm:$0xff]  ;;  %v2156_v46 = vadd.f32 %v3603_v53, %v2155_v24 }
 0x345   : > { %1933 = vst.msk [vmem:[#allocation3 + $0xb8] sm:$0xff] %vm1909_vm11, %v1860_v31  ;;  %2392 = vmatmul.msk.f32.gmra.mxu1 %vm1983_vm12, %v1956_v44 }
 0x346   : > { %v1635_v45 = vpop.permute.xlu0 %1634  ;;  %v2215_v30 = vmax.f32 %v2156_v46, 0.0 }
 0x347   : > { %1724 = vst.msk [vmem:[#allocation3 + $0x38] sm:$0xff] %vm1716_vm10, %v1635_v45 }
 0x348   : > { %2247 = vst.msk [vmem:[%s3612_s20 + $0x90] sm:$0xff] %vm222_vm0, %v2215_v30  ;;  %v1973_v35 = vld [vmem:[#allocation3 + $0xf8] sm:$0xff] }
 0x349   : > { %1917 = vst.msk [vmem:[#allocation3 + $0x38] sm:$0xff] %vm1909_vm11, %v1828_v21  ;;  %2409 = vmatmul.msk.f32.gmra.mxu3 %vm1983_vm12, %v1973_v35 }
 0x34a   : > { %v2179_v37 = vpop.f32.mrf.mxu3 }
 0x34b   : > { %v2180_v49 = vadd.f32 %v3603_v53, %v2179_v37  ;;  %v2107_v36 = vpop.f32.mrf.mxu0 }
 0x34c   : > { %v1651_v34 = vpop.permute.xlu1 %1650  ;;  %v1965_v26 = vld [vmem:[#allocation3 + $0xb8] sm:$0xff]  ;;  %v2108_v43 = vadd.f32 %v3603_v53, %v2107_v36 }
 0x34d   : > { %v2223_v42 = vmax.f32 %v2180_v49, 0.0  ;;  %1732 = vst.msk [vmem:[#allocation3 + $0x78] sm:$0xff] %vm1716_vm10, %v1651_v34  ;;  %2401 = vmatmul.msk.f32.gmra.mxu2 %vm1983_vm12, %v1965_v26 }
 0x34e   : > { %v1844_v48 = vpop.permute.xlu0 %1843  ;;  %v2199_v57 = vmax.f32 %v2108_v43, 0.0 }
 0x34f   : > { %2255 = vst.msk [vmem:[%s3612_s20 + $0xd0] sm:$0xff] %vm222_vm0, %v2223_v42 }
 0x350   : > { %1925 = vst.msk [vmem:[#allocation3 + $0x78] sm:$0xff] %vm1909_vm11, %v1844_v48  ;;  %v1949_v47 = vld [vmem:[#allocation3 + $0x38] sm:$0xff] }
 0x351   : > { %2231 = vst.msk [vmem:[%s3612_s20 + $0x10] sm:$0xff] %vm222_vm0, %v2199_v57  ;;  %2385 = vmatmul.msk.f32.gmra.mxu0 %vm1983_vm12, %v1949_v47 }
 0x354   : > { %v2131_v52 = vpop.f32.mrf.mxu1 }
 0x355   : > { %v2132_v60 = vadd.f32 %v3603_v53, %v2131_v52 }
 0x357   : > { %v2207_v51 = vmax.f32 %v2132_v60, 0.0  ;;  %v1957_v56 = vld [vmem:[#allocation3 + $0x78] sm:$0xff] }
 0x358   : > { %2393 = vmatmul.msk.f32.gmra.mxu1 %vm1983_vm12, %v1957_v56 }
 0x359   : > { %2239 = vst.msk [vmem:[%s3612_s20 + $0x50] sm:$0xff] %vm222_vm0, %v2207_v51 }
 0x362   : > { %v2158_v1 = vpop.f32.mrf.mxu2 }
 0x363   : > { %v2159_v63 = vadd.f32 %v3603_v53, %v2158_v1 }
 0x365   : > { %v2216_v12 = vmax.f32 %v2159_v63, 0.0 }
 0x367   : > { %2248 = vst.msk [vmem:[%s3612_s20 + $0x98] sm:$0xff] %vm222_vm0, %v2216_v12 }
 0x368   : > { %v2182_v59 = vpop.f32.mrf.mxu3 }
 0x369   : > { %v2183_v9 = vadd.f32 %v3603_v53, %v2182_v59 }
 0x36b   : > { %v2224_v3 = vmax.f32 %v2183_v9, 0.0 }
 0x36c   : > { %v2110_v50 = vpop.f32.mrf.mxu0 }
 0x36d   : > { %2256 = vst.msk [vmem:[%s3612_s20 + $0xd8] sm:$0xff] %vm222_vm0, %v2224_v3  ;;  %v2111_v19 = vadd.f32 %v3603_v53, %v2110_v50 }
 0x36f   : > { %v2200_v62 = vmax.f32 %v2111_v19, 0.0 }
 0x371   : > { %2232 = vst.msk [vmem:[%s3612_s20 + $0x18] sm:$0xff] %vm222_vm0, %v2200_v62 }
 0x372   : > { %v2134_v40 = vpop.f32.mrf.mxu1 }
 0x373   : > { %v2135_v0 = vadd.f32 %v3603_v53, %v2134_v40 }
 0x375   : > { %v2208_v54 = vmax.f32 %v2135_v0, 0.0 }
 0x377   : > { %2240 = vst.msk [vmem:[%s3612_s20 + $0x58] sm:$0xff] %vm222_vm0, %v2208_v54 }
 0x37b   : > { %v2185_v38 = vpop.f32.mrf.mxu3 }
 0x37c   : > { %v2186_v10 = vadd.f32 %v3603_v53, %v2185_v38 }
 0x37e   : > { %v2225_v41 = vmax.f32 %v2186_v10, 0.0 }
 0x380   : > { %v2161_v20 = vpop.f32.mrf.mxu2  ;;  %2257 = vst.msk [vmem:[%s3612_s20 + $0xe0] sm:$0xff] %vm222_vm0, %v2225_v41 }
 0x381   : > { %v2162_v11 = vadd.f32 %v3603_v53, %v2161_v20 }
 0x383   : > { %v2217_v22 = vmax.f32 %v2162_v11, 0.0  ;;  %v2137_v32 = vpop.f32.mrf.mxu1 }
 0x384   : > { %v2138_v14 = vadd.f32 %v3603_v53, %v2137_v32 }
 0x385   : > { %2249 = vst.msk [vmem:[%s3612_s20 + $0xa0] sm:$0xff] %vm222_vm0, %v2217_v22 }
 0x386   : > { %v2209_v58 = vmax.f32 %v2138_v14, 0.0 }
 0x388   : > { %2241 = vst.msk [vmem:[%s3612_s20 + $0x60] sm:$0xff] %vm222_vm0, %v2209_v58 }
 0x38a   : > { %v2113_v13 = vpop.f32.mrf.mxu0 }
 0x38b   : > { %v2114_v4 = vadd.f32 %v3603_v53, %v2113_v13 }
 0x38d   : > { %v2201_v61 = vmax.f32 %v2114_v4, 0.0 }
 0x38f   : > { %2233 = vst.msk [vmem:[%s3612_s20 + $0x20] sm:$0xff] %vm222_vm0, %v2201_v61 }
 0x393   : > { %v2164_v15 = vpop.f32.mrf.mxu2 }
 0x394   : > { %v2165_v6 = vadd.f32 %v3603_v53, %v2164_v15 }
 0x396   : > { %v2218_v27 = vmax.f32 %v2165_v6, 0.0 }
 0x398   : > { %2250 = vst.msk [vmem:[%s3612_s20 + $0xa8] sm:$0xff] %vm222_vm0, %v2218_v27 }
 0x39a   : > { %v2188_v2 = vpop.f32.mrf.mxu3 }
 0x39b   : > { %v2189_v5 = vadd.f32 %v3603_v53, %v2188_v2  ;;  %v2116_v18 = vpop.f32.mrf.mxu0 }
 0x39c   : > { %v2117_v7 = vadd.f32 %v3603_v53, %v2116_v18 }
 0x39d   : > { %v2226_v33 = vmax.f32 %v2189_v5, 0.0 }
 0x39e   : > { %v2202_v16 = vmax.f32 %v2117_v7, 0.0 }
 0x39f   : > { %2258 = vst.msk [vmem:[%s3612_s20 + $0xe8] sm:$0xff] %vm222_vm0, %v2226_v33 }
 0x3a0   : > { %2234 = vst.msk [vmem:[%s3612_s20 + $0x28] sm:$0xff] %vm222_vm0, %v2202_v16 }
 0x3a4   : > { %v2140_v17 = vpop.f32.mrf.mxu1 }
 0x3a5   : > { %v2141_v23 = vadd.f32 %v3603_v53, %v2140_v17 }
 0x3a7   : > { %v2210_v25 = vmax.f32 %v2141_v23, 0.0 }
 0x3a9   : > { %2242 = vst.msk [vmem:[%s3612_s20 + $0x68] sm:$0xff] %vm222_vm0, %v2210_v25 }
 0x3b3   : > { %v2167_v39 = vpop.f32.mrf.mxu2 }
 0x3b4   : > { %v2168_v55 = vadd.f32 %v3603_v53, %v2167_v39 }
 0x3b6   : > { %v2219_v8 = vmax.f32 %v2168_v55, 0.0 }
 0x3b8   : > { %2251 = vst.msk [vmem:[%s3612_s20 + $0xb0] sm:$0xff] %vm222_vm0, %v2219_v8  ;;  %v2191_v28 = vpop.f32.mrf.mxu3 }
 0x3b9   : > { %v2192_v29 = vadd.f32 %v3603_v53, %v2191_v28 }
 0x3bb   : > { %v2227_v24 = vmax.f32 %v2192_v29, 0.0 }
 0x3bc   : > { %v2119_v31 = vpop.f32.mrf.mxu0 }
 0x3bd   : > { %2259 = vst.msk [vmem:[%s3612_s20 + $0xf0] sm:$0xff] %vm222_vm0, %v2227_v24  ;;  %v2120_v44 = vadd.f32 %v3603_v53, %v2119_v31 }
 0x3bf   : > { %v2203_v46 = vmax.f32 %v2120_v44, 0.0 }
 0x3c1   : > { %2235 = vst.msk [vmem:[%s3612_s20 + $0x30] sm:$0xff] %vm222_vm0, %v2203_v46 }
 0x3c2   : > { %v2143_v45 = vpop.f32.mrf.mxu1 }
 0x3c3   : > { %v2144_v30 = vadd.f32 %v3603_v53, %v2143_v45 }
 0x3c5   : > { %v2211_v21 = vmax.f32 %v2144_v30, 0.0 }
 0x3c7   : > { %2243 = vst.msk [vmem:[%s3612_s20 + $0x70] sm:$0xff] %vm222_vm0, %v2211_v21 }
 0x3cc   : > { %v2194_v35 = vpop.f32.mrf.mxu3 }
 0x3cd   : > { %v2195_v37 = vadd.f32 %v3603_v53, %v2194_v35 }
 0x3ce   : > { %v2122_v49 = vpop.f32.mrf.mxu0 }
 0x3cf   : > { %v2228_v36 = vmax.f32 %v2195_v37, 0.0  ;;  %v2123_v34 = vadd.f32 %v3603_v53, %v2122_v49 }
 0x3d0   : > { %v2170_v26 = vpop.f32.mrf.mxu2 }
 0x3d1   : > { %v2171_v43 = vadd.f32 %v3603_v53, %v2170_v26  ;;  %2260 = vst.msk [vmem:[%s3612_s20 + $0xf8] sm:$0xff] %vm222_vm0, %v2228_v36  ;;  %v2204_v42 = vmax.f32 %v2123_v34, 0.0 }
 0x3d3   : > { %v2220_v48 = vmax.f32 %v2171_v43, 0.0  ;;  %2236 = vst.msk [vmem:[%s3612_s20 + $0x38] sm:$0xff] %vm222_vm0, %v2204_v42 }
 0x3d5   : > { %2252 = vst.msk [vmem:[%s3612_s20 + $0xb8] sm:$0xff] %vm222_vm0, %v2220_v48  ;;  %v2146_v57 = vpop.f32.mrf.mxu1 }
 0x3d6   : > { %v2147_v47 = vadd.f32 %v3603_v53, %v2146_v57 }
 0x3d8   : > { %v2212_v52 = vmax.f32 %v2147_v47, 0.0 }
 0x3da   : > { %2244 = vst.msk [vmem:[%s3612_s20 + $0x78] sm:$0xff] %vm222_vm0, %v2212_v52 }
 0x3db PF: > { %s13_s14 = sadd.s32 1, %s2485_s14   ;;  %s3846_s12 = smov %s2481_s13 }
 0x3dc   : > { %p10_p5 = scmp.ge.s32.totalorder %s13_s14, 4   ;;  %s3847_s13 = smov %s3849_s15 }
 0x3de   :  { %12 = sbr.rel (!%p10_p5) target bundleno = 2 (0x2), region = 71 }

</bundles_post_ra>
